<compile_context>
chip_gen: v7x
topology: tpu7x:2x2x1
jax: 0.10.0
libtpu: 0.0.40
codegen_flags: <defaults>
</compile_context>

<pallas_src>
import math
from functools import partial

import jax
import jax.numpy as jnp
from jax import lax
from jax.experimental import pallas as pl
from jax.experimental.pallas import tpu as pltpu


# contract the last dim of both operands (y = a @ b.T without an XLU transpose)
_DN_LAST_LAST = (((1,), (1,)), ((), ()))


def _attention_body(x_ref, wqkv_ref, bqkv_ref, wo_ref, bo_ref, out_ref,
                    attn_ref, qkv_scr, ctx_scr, *, n_heads, d_k,
                    compute_dtype):
    """One batch-element grid step.

    x_ref   : (1, S, D)     bf16 activations for this batch element
    wqkv_ref: (D, 3D)       bf16 packed [Wq.T | Wk.T | Wv.T] (scale folded in)
    bqkv_ref: (1, 3D)       f32 packed biases (scale folded into the q part)
    wo_ref  : (D, D)        bf16 Wo.T (so out = ctx @ Wo.T)
    bo_ref  : (1, D)        f32 output bias
    out_ref : (1, S, D)     attention output
    attn_ref: (1, H, S, S)  attention probabilities, or None
    qkv_scr : (S, 3D)       bf16 VMEM scratch (fused QKV projection)
    ctx_scr : (S, D)        bf16 VMEM scratch (per-head contexts, concatenated)
    """
    D = n_heads * d_k
    x = x_ref[0]                                                  # (S, D) bf16

    # Full-width fused QKV projection: single MXU pass, f32 accumulation,
    # bias added in f32, result staged in bf16 VMEM scratch.
    qkv = jnp.dot(x, wqkv_ref[...],
                  preferred_element_type=jnp.float32) + bqkv_ref[...]
    qkv_scr[...] = qkv.astype(compute_dtype)                      # (S, 3D)

    # Per-head attention.  Static Python loop -> static ref slices (no dynamic
    # lane slicing); each head's intermediates die inside its iteration.
    for h in range(n_heads):
        q = qkv_scr[:, h * d_k:(h + 1) * d_k]                     # (S, d_k)
        k = qkv_scr[:, D + h * d_k:D + (h + 1) * d_k]             # (S, d_k)
        v = qkv_scr[:, 2 * D + h * d_k:2 * D + (h + 1) * d_k]     # (S, d_k)

        # scores[i, j] = q_i . k_j  (1/sqrt(d_k) already folded into Wq / bq).
        scores = lax.dot_general(q, k, _DN_LAST_LAST,
                                 preferred_element_type=jnp.float32)  # (S, S)

        # Numerically stable softmax.
        m = jnp.max(scores, axis=-1, keepdims=True)
        e = jnp.exp(scores - m)
        denom = jnp.sum(e, axis=-1, keepdims=True)

        if attn_ref is not None:            # trace-time branch
            attn = e / denom                 # exact divide: rows sum to 1
            attn_ref[0, h] = attn.astype(attn_ref.dtype)
        else:
            attn = e * pl.reciprocal(denom, approx=True)   # EUP slot

        # Per-head context, staged into the concatenated bf16 context slab.
        ctx = jnp.dot(attn.astype(compute_dtype), v,
                      preferred_element_type=jnp.float32)          # (S, d_k)
        ctx_scr[:, h * d_k:(h + 1) * d_k] = ctx.astype(compute_dtype)

    # Single full-width output projection + bias.
    out = jnp.dot(ctx_scr[...], wo_ref[...],
                  preferred_element_type=jnp.float32) + bo_ref[...]
    out_ref[0] = out.astype(out_ref.dtype)


def _kernel_with_attn(x_ref, wqkv_ref, bqkv_ref, wo_ref, bo_ref,
                      out_ref, attn_ref, qkv_scr, ctx_scr, *,
                      n_heads, d_k, compute_dtype):
    _attention_body(x_ref, wqkv_ref, bqkv_ref, wo_ref, bo_ref, out_ref,
                    attn_ref, qkv_scr, ctx_scr, n_heads=n_heads, d_k=d_k,
                    compute_dtype=compute_dtype)


def _kernel_no_attn(x_ref, wqkv_ref, bqkv_ref, wo_ref, bo_ref,
                    out_ref, qkv_scr, ctx_scr, *,
                    n_heads, d_k, compute_dtype):
    _attention_body(x_ref, wqkv_ref, bqkv_ref, wo_ref, bo_ref, out_ref,
                    None, qkv_scr, ctx_scr, n_heads=n_heads, d_k=d_k,
                    compute_dtype=compute_dtype)


def siglip_attention(x, wq, bq, wk, bk, wv, bv, wo, bo, *, n_heads,
                     output_attentions=True, compute_dtype=jnp.bfloat16,
                     attn_dtype=None, vmem_limit_bytes=48 * 1024 * 1024):
    """x: (B, S, D); weights (D, D) in PyTorch (out, in) convention; biases (D,).

    Returns (out, attn) with attn=None when output_attentions=False.
    attn_dtype=None -> attention probabilities are returned in x.dtype
    (use bf16 inputs in production to halve the (B, H, S, S) HBM writeback).
    """
    B, S, D = x.shape
    assert D % n_heads == 0, "d_model must be divisible by n_heads"
    d_k = D // n_heads
    scale = 1.0 / math.sqrt(d_k)
    cd = compute_dtype
    if attn_dtype is None:
        attn_dtype = x.dtype

    # One-time weight prep (done outside the kernel, amortized over the batch):
    #   - fold the 1/sqrt(d_k) scale into Wq and bq,
    #   - pack [Wq.T | Wk.T | Wv.T] into one (D, 3D) bf16 matrix,
    #   - keep biases in f32 (added to the f32-accumulated products).
    x_c = x.astype(cd)
    w_qkv = jnp.concatenate([(wq * scale).T, wk.T, wv.T], axis=1).astype(cd)
    b_qkv = jnp.concatenate([bq * scale, bk, bv]).reshape(1, 3 * D)
    b_qkv = b_qkv.astype(jnp.float32)
    w_o = wo.T.astype(cd)                                          # (D, D)
    b_o = bo.reshape(1, D).astype(jnp.float32)

    # Activation / output blocks indexed by batch; weight blocks have constant
    # block indices -> fetched once, VMEM-resident for the whole grid.
    x_spec = pl.BlockSpec((1, S, D), lambda b: (b, 0, 0))
    wqkv_spec = pl.BlockSpec((D, 3 * D), lambda b: (0, 0))
    bqkv_spec = pl.BlockSpec((1, 3 * D), lambda b: (0, 0))
    wo_spec = pl.BlockSpec((D, D), lambda b: (0, 0))
    bo_spec = pl.BlockSpec((1, D), lambda b: (0, 0))
    out_spec = pl.BlockSpec((1, S, D), lambda b: (b, 0, 0))

    in_specs = [x_spec, wqkv_spec, bqkv_spec, wo_spec, bo_spec]
    args = (x_c, w_qkv, b_qkv, w_o, b_o)
    scratch = [pltpu.VMEM((S, 3 * D), cd),    # fused QKV slab
               pltpu.VMEM((S, D), cd)]        # concatenated per-head contexts
    cparams = pltpu.CompilerParams(
        dimension_semantics=("parallel",),
        vmem_limit_bytes=vmem_limit_bytes)

    if output_attentions:
        out, attn = pl.pallas_call(
            partial(_kernel_with_attn, n_heads=n_heads, d_k=d_k,
                    compute_dtype=cd),
            out_shape=(
                jax.ShapeDtypeStruct((B, S, D), x.dtype),
                jax.ShapeDtypeStruct((B, n_heads, S, S), attn_dtype),
            ),
            grid=(B,),
            in_specs=in_specs,
            out_specs=(out_spec,
                       pl.BlockSpec((1, n_heads, S, S),
                                    lambda b: (b, 0, 0, 0))),
            scratch_shapes=scratch,
            compiler_params=cparams,
        )(*args)
        return out, attn

    out = pl.pallas_call(
        partial(_kernel_no_attn, n_heads=n_heads, d_k=d_k, compute_dtype=cd),
        out_shape=jax.ShapeDtypeStruct((B, S, D), x.dtype),
        grid=(B,),
        in_specs=in_specs,
        out_specs=out_spec,
        scratch_shapes=scratch,
        compiler_params=cparams,
    )(*args)
    return out, None


def _reference(x, wq, bq, wk, bk, wv, bv, wo, bo, n_heads):
    """Pure-JAX f32 reference mirroring the PyTorch forward (mask=None, eval)."""
    B, S, D = x.shape
    d_k = D // n_heads

    def lin(a, w, b):
        return a @ w.T + b

    q = lin(x, wq, bq).reshape(B, S, n_heads, d_k).transpose(0, 2, 1, 3)
    k = lin(x, wk, bk).reshape(B, S, n_heads, d_k).transpose(0, 2, 1, 3)
    v = lin(x, wv, bv).reshape(B, S, n_heads, d_k).transpose(0, 2, 1, 3)
    scores = jnp.einsum("bhqd,bhkd->bhqk", q, k) / math.sqrt(d_k)
    attn = jax.nn.softmax(scores, axis=-1)
    ctx = jnp.einsum("bhqk,bhkd->bhqd", attn, v)
    ctx = ctx.transpose(0, 2, 1, 3).reshape(B, S, D)
    out = lin(ctx, wo, bo)
    return out, attn


if __name__ == "__main__":
    # Small but lane-friendly shapes: d_k = 128 keeps per-head slices
    # lane-aligned; S = 128 keeps the (S, S) score tile lane/sublane dense.
    B, S, D, H = 2, 128, 256, 2

    key = jax.random.PRNGKey(0)
    ks = jax.random.split(key, 9)

    def bf16_roundtrip(a):
        # Kernel computes with bf16 operands; round-trip the test inputs so
        # kernel and reference see identical values (isolates internal rounding).
        return a.astype(jnp.bfloat16).astype(jnp.float32)

    x = bf16_roundtrip(jax.random.normal(ks[0], (B, S, D), dtype=jnp.float32))

    def init_w(k):
        return bf16_roundtrip(
            jax.random.normal(k, (D, D), dtype=jnp.float32) * 0.05)

    def init_b(k):
        return jax.random.normal(k, (D,), dtype=jnp.float32) * 0.05

    wq, wk, wv, wo = init_w(ks[1]), init_w(ks[2]), init_w(ks[3]), init_w(ks[4])
    bq, bk, bv, bo = init_b(ks[5]), init_b(ks[6]), init_b(ks[7]), init_b(ks[8])

    out, attn = siglip_attention(x, wq, bq, wk, bk, wv, bv, wo, bo,
                                 n_heads=H, output_attentions=True)
    jax.block_until_ready((out, attn))

    ref_out, ref_attn = _reference(x, wq, bq, wk, bk, wv, bv, wo, bo, H)
    # bf16 matmul operands + bf16 staging slabs -> loosened tolerance vs f32.
    assert jnp.allclose(out, ref_out, atol=2.5e-2, rtol=2.5e-2)
    assert jnp.allclose(attn.astype(jnp.float32), ref_attn,
                        atol=2.5e-2, rtol=2.5e-2)

    # Cheaper path: no attention-weights writeback, approx softmax reciprocal.
    out2, none_attn = siglip_attention(x, wq, bq, wk, bk, wv, bv, wo, bo,
                                       n_heads=H, output_attentions=False)
    jax.block_until_ready(out2)
    assert none_attn is None
    assert jnp.allclose(out2, ref_out, atol=2.5e-2, rtol=2.5e-2)

    print("KERNEL_OK")
</pallas_src>

<mosaic_0001>
module attributes {stable_mosaic.version = 11 : i64} {
  func.func @_kernel_with_attn(%arg0: i32, %arg1: memref<1x128x256xbf16, #tpu.memory_space<vmem>>, %arg2: memref<256x768xbf16, #tpu.memory_space<vmem>>, %arg3: memref<1x768xf32, #tpu.memory_space<vmem>>, %arg4: memref<256x256xbf16, #tpu.memory_space<vmem>>, %arg5: memref<1x256xf32, #tpu.memory_space<vmem>>, %arg6: memref<1x128x256xf32, #tpu.memory_space<vmem>>, %arg7: memref<1x2x128x128xf32, #tpu.memory_space<vmem>>, %arg8: memref<128x768xbf16, #tpu.memory_space<vmem>>, %arg9: memref<128x256xbf16, #tpu.memory_space<vmem>>) attributes {dimension_semantics = [#tpu.dimension_semantics<parallel>], iteration_bounds = array<i64: 2>, scalar_prefetch = 0 : i64, scratch_operands = 2 : i64, tpu.core_type = #tpu.core_type<tc>, window_params = [{transform_indices = @transform_0, window_bounds = array<i64: 1, 128, 256>}, {pipeline_mode = #tpu.pipeline_mode<synchronous>, transform_indices = @transform_1, window_bounds = array<i64: 256, 768>}, {pipeline_mode = #tpu.pipeline_mode<synchronous>, transform_indices = @transform_2, window_bounds = array<i64: 1, 768>}, {pipeline_mode = #tpu.pipeline_mode<synchronous>, transform_indices = @transform_3, window_bounds = array<i64: 256, 256>}, {pipeline_mode = #tpu.pipeline_mode<synchronous>, transform_indices = @transform_4, window_bounds = array<i64: 1, 256>}, {transform_indices = @transform_5, window_bounds = array<i64: 1, 128, 256>}, {transform_indices = @transform_6, window_bounds = array<i64: 1, 2, 128, 128>}]} {
    %c0 = arith.constant 0 : index
    %c0_0 = arith.constant 0 : index
    %c0_1 = arith.constant 0 : index
    %0 = vector.load %arg1[%c0, %c0_0, %c0_1] : memref<1x128x256xbf16, #tpu.memory_space<vmem>>, vector<1x128x256xbf16>
    %1 = vector.shape_cast %0 : vector<1x128x256xbf16> to vector<128x256xbf16>
    %c0_2 = arith.constant 0 : index
    %c0_3 = arith.constant 0 : index
    %2 = vector.load %arg2[%c0_2, %c0_3] : memref<256x768xbf16, #tpu.memory_space<vmem>>, vector<256x768xbf16>
    %cst = arith.constant dense<0.000000e+00> : vector<128x768xf32>
    %3 = tpu.matmul %1, %2, %cst {dimension_numbers = #tpu.dot_dimension_numbers<[1], [0], [0], [1], [0, 0, 1, 1], [], []>} : vector<128x256xbf16>, vector<256x768xbf16>, vector<128x768xf32> -> vector<128x768xf32>
    %c0_4 = arith.constant 0 : index
    %c0_5 = arith.constant 0 : index
    %4 = vector.load %arg3[%c0_4, %c0_5] : memref<1x768xf32, #tpu.memory_space<vmem>>, vector<1x768xf32>
    %5 = vector.broadcast %4 : vector<1x768xf32> to vector<128x768xf32>
    %6 = arith.addf %3, %5 : vector<128x768xf32>
    %7 = arith.truncf %6 : vector<128x768xf32> to vector<128x768xbf16>
    %c0_6 = arith.constant 0 : index
    %c0_7 = arith.constant 0 : index
    %8 = vector.load %arg8[%c0_6, %c0_7] : memref<128x768xbf16, #tpu.memory_space<vmem>>, vector<128x768xbf16>
    tpu.vector_store %arg8[%c0_6, %c0_7], %7 {strides = array<i32>} : memref<128x768xbf16, #tpu.memory_space<vmem>>, vector<128x768xbf16>,
    %c0_8 = arith.constant 0 : index
    %c0_9 = arith.constant 0 : index
    %9 = vector.load %arg8[%c0_8, %c0_9] : memref<128x768xbf16, #tpu.memory_space<vmem>>, vector<128x128xbf16>
    %c0_10 = arith.constant 0 : index
    %c256 = arith.constant 256 : index
    %10 = vector.load %arg8[%c0_10, %c256] : memref<128x768xbf16, #tpu.memory_space<vmem>>, vector<128x128xbf16>
    %c0_11 = arith.constant 0 : index
    %c512 = arith.constant 512 : index
    %11 = vector.load %arg8[%c0_11, %c512] : memref<128x768xbf16, #tpu.memory_space<vmem>>, vector<128x128xbf16>
    %cst_12 = arith.constant dense<0.000000e+00> : vector<128x128xf32>
    %12 = tpu.matmul %9, %10, %cst_12 {dimension_numbers = #tpu.dot_dimension_numbers<[1], [1], [0], [0], [0, 0, 1, 0], [], []>} : vector<128x128xbf16>, vector<128x128xbf16>, vector<128x128xf32> -> vector<128x128xf32>
    %cst_13 = arith.constant dense<0xFF800000> : vector<128xf32>
    %13 = vector.multi_reduction <maximumf>, %12, %cst_13 [1] : vector<128x128xf32> to vector<128xf32>
    %14 = vector.shape_cast %13 : vector<128xf32> to vector<128x1xf32>
    %15 = vector.broadcast %14 : vector<128x1xf32> to vector<128x128xf32>
    %16 = arith.subf %12, %15 : vector<128x128xf32>
    %17 = math.exp %16 : vector<128x128xf32>
    %cst_14 = arith.constant dense<0.000000e+00> : vector<128xf32>
    %18 = vector.multi_reduction <add>, %17, %cst_14 [1] : vector<128x128xf32> to vector<128xf32>
    %19 = vector.shape_cast %18 : vector<128xf32> to vector<128x1xf32>
    %20 = vector.broadcast %19 : vector<128x1xf32> to vector<128x128xf32>
    %21 = arith.divf %17, %20 : vector<128x128xf32>
    %c0_15 = arith.constant 0 : index
    %c0_16 = arith.constant 0 : index
    %c0_17 = arith.constant 0 : index
    %c0_18 = arith.constant 0 : index
    %22 = vector.load %arg7[%c0_15, %c0_16, %c0_17, %c0_18] : memref<1x2x128x128xf32, #tpu.memory_space<vmem>>, vector<1x1x128x128xf32>
    %23 = vector.shape_cast %22 : vector<1x1x128x128xf32> to vector<128x128xf32>
    %24 = vector.shape_cast %21 : vector<128x128xf32> to vector<1x1x128x128xf32>
    tpu.vector_store %arg7[%c0_15, %c0_16, %c0_17, %c0_18], %24 {strides = array<i32>} : memref<1x2x128x128xf32, #tpu.memory_space<vmem>>, vector<1x1x128x128xf32>,
    %25 = arith.truncf %21 : vector<128x128xf32> to vector<128x128xbf16>
    %cst_19 = arith.constant dense<0.000000e+00> : vector<128x128xf32>
    %26 = tpu.matmul %25, %11, %cst_19 {dimension_numbers = #tpu.dot_dimension_numbers<[1], [0], [0], [1], [0, 0, 1, 1], [], []>} : vector<128x128xbf16>, vector<128x128xbf16>, vector<128x128xf32> -> vector<128x128xf32>
    %27 = arith.truncf %26 : vector<128x128xf32> to vector<128x128xbf16>
    %c0_20 = arith.constant 0 : index
    %c0_21 = arith.constant 0 : index
    %28 = vector.load %arg9[%c0_20, %c0_21] : memref<128x256xbf16, #tpu.memory_space<vmem>>, vector<128x128xbf16>
    tpu.vector_store %arg9[%c0_20, %c0_21], %27 {strides = array<i32>} : memref<128x256xbf16, #tpu.memory_space<vmem>>, vector<128x128xbf16>,
    %c0_22 = arith.constant 0 : index
    %c128 = arith.constant 128 : index
    %29 = vector.load %arg8[%c0_22, %c128] : memref<128x768xbf16, #tpu.memory_space<vmem>>, vector<128x128xbf16>
    %c0_23 = arith.constant 0 : index
    %c384 = arith.constant 384 : index
    %30 = vector.load %arg8[%c0_23, %c384] : memref<128x768xbf16, #tpu.memory_space<vmem>>, vector<128x128xbf16>
    %c0_24 = arith.constant 0 : index
    %c640 = arith.constant 640 : index
    %31 = vector.load %arg8[%c0_24, %c640] : memref<128x768xbf16, #tpu.memory_space<vmem>>, vector<128x128xbf16>
    %cst_25 = arith.constant dense<0.000000e+00> : vector<128x128xf32>
    %32 = tpu.matmul %29, %30, %cst_25 {dimension_numbers = #tpu.dot_dimension_numbers<[1], [1], [0], [0], [0, 0, 1, 0], [], []>} : vector<128x128xbf16>, vector<128x128xbf16>, vector<128x128xf32> -> vector<128x128xf32>
    %cst_26 = arith.constant dense<0xFF800000> : vector<128xf32>
    %33 = vector.multi_reduction <maximumf>, %32, %cst_26 [1] : vector<128x128xf32> to vector<128xf32>
    %34 = vector.shape_cast %33 : vector<128xf32> to vector<128x1xf32>
    %35 = vector.broadcast %34 : vector<128x1xf32> to vector<128x128xf32>
    %36 = arith.subf %32, %35 : vector<128x128xf32>
    %37 = math.exp %36 : vector<128x128xf32>
    %cst_27 = arith.constant dense<0.000000e+00> : vector<128xf32>
    %38 = vector.multi_reduction <add>, %37, %cst_27 [1] : vector<128x128xf32> to vector<128xf32>
    %39 = vector.shape_cast %38 : vector<128xf32> to vector<128x1xf32>
    %40 = vector.broadcast %39 : vector<128x1xf32> to vector<128x128xf32>
    %41 = arith.divf %37, %40 : vector<128x128xf32>
    %c0_28 = arith.constant 0 : index
    %c1 = arith.constant 1 : index
    %c0_29 = arith.constant 0 : index
    %c0_30 = arith.constant 0 : index
    %42 = vector.load %arg7[%c0_28, %c1, %c0_29, %c0_30] : memref<1x2x128x128xf32, #tpu.memory_space<vmem>>, vector<1x1x128x128xf32>
    %43 = vector.shape_cast %42 : vector<1x1x128x128xf32> to vector<128x128xf32>
    %44 = vector.shape_cast %41 : vector<128x128xf32> to vector<1x1x128x128xf32>
    tpu.vector_store %arg7[%c0_28, %c1, %c0_29, %c0_30], %44 {strides = array<i32>} : memref<1x2x128x128xf32, #tpu.memory_space<vmem>>, vector<1x1x128x128xf32>,
    %45 = arith.truncf %41 : vector<128x128xf32> to vector<128x128xbf16>
    %cst_31 = arith.constant dense<0.000000e+00> : vector<128x128xf32>
    %46 = tpu.matmul %45, %31, %cst_31 {dimension_numbers = #tpu.dot_dimension_numbers<[1], [0], [0], [1], [0, 0, 1, 1], [], []>} : vector<128x128xbf16>, vector<128x128xbf16>, vector<128x128xf32> -> vector<128x128xf32>
    %47 = arith.truncf %46 : vector<128x128xf32> to vector<128x128xbf16>
    %c0_32 = arith.constant 0 : index
    %c128_33 = arith.constant 128 : index
    %48 = vector.load %arg9[%c0_32, %c128_33] : memref<128x256xbf16, #tpu.memory_space<vmem>>, vector<128x128xbf16>
    tpu.vector_store %arg9[%c0_32, %c128_33], %47 {strides = array<i32>} : memref<128x256xbf16, #tpu.memory_space<vmem>>, vector<128x128xbf16>,
    %c0_34 = arith.constant 0 : index
    %c0_35 = arith.constant 0 : index
    %49 = vector.load %arg9[%c0_34, %c0_35] : memref<128x256xbf16, #tpu.memory_space<vmem>>, vector<128x256xbf16>
    %c0_36 = arith.constant 0 : index
    %c0_37 = arith.constant 0 : index
    %50 = vector.load %arg4[%c0_36, %c0_37] : memref<256x256xbf16, #tpu.memory_space<vmem>>, vector<256x256xbf16>
    %cst_38 = arith.constant dense<0.000000e+00> : vector<128x256xf32>
    %51 = tpu.matmul %49, %50, %cst_38 {dimension_numbers = #tpu.dot_dimension_numbers<[1], [0], [0], [1], [0, 0, 1, 1], [], []>} : vector<128x256xbf16>, vector<256x256xbf16>, vector<128x256xf32> -> vector<128x256xf32>
    %c0_39 = arith.constant 0 : index
    %c0_40 = arith.constant 0 : index
    %52 = vector.load %arg5[%c0_39, %c0_40] : memref<1x256xf32, #tpu.memory_space<vmem>>, vector<1x256xf32>
    %53 = vector.broadcast %52 : vector<1x256xf32> to vector<128x256xf32>
    %54 = arith.addf %51, %53 : vector<128x256xf32>
    %c0_41 = arith.constant 0 : index
    %c0_42 = arith.constant 0 : index
    %c0_43 = arith.constant 0 : index
    %55 = vector.load %arg6[%c0_41, %c0_42, %c0_43] : memref<1x128x256xf32, #tpu.memory_space<vmem>>, vector<1x128x256xf32>
    %56 = vector.shape_cast %55 : vector<1x128x256xf32> to vector<128x256xf32>
    %57 = vector.shape_cast %54 : vector<128x256xf32> to vector<1x128x256xf32>
    tpu.vector_store %arg6[%c0_41, %c0_42, %c0_43], %57 {strides = array<i32>} : memref<1x128x256xf32, #tpu.memory_space<vmem>>, vector<1x128x256xf32>,
    return
  }
  func.func @transform_0(%arg0: i32) -> (i32, i32, i32) {
    %c0_i32 = arith.constant 0 : i32
    %c0_i32_0 = arith.constant 0 : i32
    %c0_i32_1 = arith.constant 0 : i32
    return %arg0, %c0_i32, %c0_i32_0 : i32, i32, i32
  }
  func.func @transform_1(%arg0: i32) -> (i32, i32) {
    %c0_i32 = arith.constant 0 : i32
    %c0_i32_0 = arith.constant 0 : i32
    %c0_i32_1 = arith.constant 0 : i32
    return %c0_i32, %c0_i32_0 : i32, i32
  }
  func.func @transform_2(%arg0: i32) -> (i32, i32) {
    %c0_i32 = arith.constant 0 : i32
    %c0_i32_0 = arith.constant 0 : i32
    %c0_i32_1 = arith.constant 0 : i32
    return %c0_i32, %c0_i32_0 : i32, i32
  }
  func.func @transform_3(%arg0: i32) -> (i32, i32) {
    %c0_i32 = arith.constant 0 : i32
    %c0_i32_0 = arith.constant 0 : i32
    %c0_i32_1 = arith.constant 0 : i32
    return %c0_i32, %c0_i32_0 : i32, i32
  }
  func.func @transform_4(%arg0: i32) -> (i32, i32) {
    %c0_i32 = arith.constant 0 : i32
    %c0_i32_0 = arith.constant 0 : i32
    %c0_i32_1 = arith.constant 0 : i32
    return %c0_i32, %c0_i32_0 : i32, i32
  }
  func.func @transform_5(%arg0: i32) -> (i32, i32, i32) {
    %c0_i32 = arith.constant 0 : i32
    %c0_i32_0 = arith.constant 0 : i32
    %c0_i32_1 = arith.constant 0 : i32
    return %arg0, %c0_i32, %c0_i32_0 : i32, i32, i32
  }
  func.func @transform_6(%arg0: i32) -> (i32, i32, i32, i32) {
    %c0_i32 = arith.constant 0 : i32
    %c0_i32_0 = arith.constant 0 : i32
    %c0_i32_1 = arith.constant 0 : i32
    %c0_i32_2 = arith.constant 0 : i32
    return %arg0, %c0_i32, %c0_i32_0, %c0_i32_1 : i32, i32, i32, i32
  }
}

</mosaic_0001>

<bundles_post_ra>
// kernel: tpu_custom_call.1
= control target key start
LH: loop header
LB: loop body
LE: loop exit
PB: predicated region body
PF: predicated region fallthrough
CT: control target
= control target key end

     0   :  { %12 = vsyncpa [#allocation5], 0  ;;  %s4867_s0 = inlined_call_operand.hbm [shape: bf16[2,128,256], index: 0, kind: input, shape index: {}]   ;;  %s4868_s1 = inlined_call_operand.hbm [shape: bf16[256,768], index: 1, kind: input, shape index: {}]   ;;  %s4869_s2 = inlined_call_operand.vmem [shape: f32[1,768], index: 2, kind: input, shape index: {}]   ;;  %s4870_s3 = inlined_call_operand.hbm [shape: bf16[256,256], index: 3, kind: input, shape index: {}]   ;;  %s4871_s4 = inlined_call_operand.vmem [shape: f32[1,256], index: 4, kind: input, shape index: {}]   ;;  %s4872_s5 = inlined_call_operand.hbm [shape: f32[2,128,256], index: 5, kind: output, shape index: {0}]   ;;  %s4873_s6 = inlined_call_operand.hbm [shape: f32[2,2,128,128], index: 6, kind: output, shape index: {1}]  }
   0x1   :  { %14 = vsyncpa [#allocation5 + $0x1], 0 }
   0x2   :  { %15 = vsyncpa [#allocation8], 0 }
   0x3   :  { %16 = vsyncpa [#allocation6], 0 }
   0x4   :  { %18 = vsyncpa [#allocation6 + $0x1], 0 }
   0x5   :  { %19 = vsyncpa [#allocation12], 0 }
   0x6   :  { %21 = vsyncpa [#allocation12 + $0x1], 0  ;;  %s3818_s21 = smov 0   ;;  %s3820_s22 = smov 0  }
   0x7   :  { %s3822_s23 = smov 0   ;;  %s3824_s24 = smov 0  }
   0x8 LB: > { %s3839_s25 = sadd.s32 4294967295, %s3768_s24   ;;  %s2779_s26 = sadd.s32 4294967294, %s3768_s24   ;;  %s3768_s24 = sphi %s3824_s24, %s4915_s24   ;;  %s3764_s23 = sphi %s3822_s23, %s4914_s23   ;;  %s3760_s22 = sphi %s3820_s22, %s4913_s22   ;;  %s3756_s21 = sphi %s3818_s21, %s4912_s21  }
   0x9   : > { %p47_p0 = scmp.ne.s32.totalorder %s3760_s22, %s3756_s21  ;;  %p4874_p1 = scmp.eq.s32.totalorder %s3839_s25, 0 }
   0xa   : > { %p161_p3 = scmp.eq.s32.totalorder %s2779_s26, 1  ;;  %p2780_p5 = scmp.ge.s32.totalorder %s3768_s24, 1 }
   0xb   : > { %p3848_p4 = por %p4874_p1, %p47_p0  ;;  %p194_p7 = scmp.lt.s32.totalorder %s3768_s24, 3 }
   0xc   : > { %p3853_p6 = por %p161_p3, %p47_p0  ;;  %s3770_s30 = smov [#allocation7]  }
   0xd   : > { %s4881_s27 = scalar_select %p3848_p4, 1, 0 }
   0xe   : > { %s4882_s28 = scalar_select %p3853_p6, 1, 0 }
   0xf   : > { %p3858_p8 = pnand %p2780_p5, %p194_p7  ;;  %s206_s7 = sshll.u32 %s3770_s30, 4  ;;  %s3862_s7 = int_to_ptr.vmem [resolvable:$true] %s206_s7 }
  0x10   : > { %s3771_s9 = smov [#allocation9]   ;;  %s3580_s13 = scalar_lea.hbm %s4868_s1, 12288 }
  0x11   : > { %p3170_p9 = pneg %p3858_p8  ;;  %s222_s10 = sshll.u32 %s3771_s9, 4  ;;  %s3873_s10 = int_to_ptr.vmem [resolvable:$true] %s222_s10 }
  0x12   : > { %p3581_p12 = scmp.ne.s32.totalorder %s4868_s1, %s3580_s13  ;;  %p3587_p5 = scmp.lt.u32.totalorder %s3580_s13, %s4868_s1 }
  0x13   : > { %p3869_p11 = pnand %p3170_p9, %p4874_p1 }
  0x15   : > { %p3582_p13 = pneg %p3869_p11 }
  0x17   : > { %p3583_p0 = pnand %p3582_p13, %p3581_p12 }
  0x19   : > { %p3584_p3 = pneg %p3583_p0 }
  0x1b   : > { %p3589_p7 = pnand %p3587_p5, %p3584_p3 }
  0x1d   : > { %3592 = shalt.err (!%p3589_p7)
}
  0x1e   : > { %s3593_s18 = scalar_lea.vmem %s3862_s7, 12288  ;;  %p3601_p2 = scmp.lt.s32.totalorder %s3862_s7, %s3862_s7 }
  0x1f   : > { %p3594_p9 = scmp.ne.s32.totalorder %s3862_s7, %s3593_s18  ;;  %p3602_p12 = scmp.lt.s32.totalorder %s3593_s18, %s3593_s18 }
  0x21   : > { %p3596_p10 = pnand %p3594_p9, %p3582_p13  ;;  %p3603_p0 = por %p3602_p12, %p3601_p2 }
  0x23   : > { %p3597_p1 = pneg %p3596_p10 }
  0x25   : > { %p3604_p6 = pnand %p3603_p0, %p3597_p1 }
  0x27   : > { %3607 = shalt.err (!%p3604_p6)
}
  0x28   : > { %s3772_s19 = smov 384   ;;  %s3773_s20 = smov 24  }
  0x29   : > { %3173 = dma.hbm_to_vmem [thread:$0]  (!%p3869_p11), %s4868_s1, 12288, %s3862_s7, [#allocation8], %s3772_s19, %s3772_s19, %s3773_s20  }
  0x2a   : > { %s3608_s12 = scalar_lea.hbm %s4870_s3, 4096 }
  0x2b   : > { %p3609_p2 = scmp.ne.s32.totalorder %s4870_s3, %s3608_s12  ;;  %p3615_p10 = scmp.lt.u32.totalorder %s3608_s12, %s4870_s3 }
  0x2d   : > { %p3611_p1 = pnand %p3609_p2, %p3582_p13 }
  0x2f   : > { %p3612_p6 = pneg %p3611_p1 }
  0x31   : > { %p3617_p3 = pnand %p3615_p10, %p3612_p6 }
  0x33   : > { %3620 = shalt.err (!%p3617_p3)
}
  0x34   : > { %s3621_s7 = scalar_lea.vmem %s3873_s10, 4096  ;;  %p3629_p12 = scmp.lt.s32.totalorder %s3873_s10, %s3873_s10 }
  0x35   : > { %p3622_p5 = scmp.ne.s32.totalorder %s3873_s10, %s3621_s7  ;;  %p3630_p0 = scmp.lt.s32.totalorder %s3621_s7, %s3621_s7 }
  0x37   : > { %p3624_p7 = pnand %p3622_p5, %p3582_p13  ;;  %p3631_p2 = por %p3630_p0, %p3629_p12 }
  0x39   : > { %p3625_p9 = pneg %p3624_p7 }
  0x3b   : > { %p3632_p1 = pnand %p3631_p2, %p3625_p9 }
  0x3d   : > { %3635 = shalt.err (!%p3632_p1)
}
  0x3e   : > { %s3774_s17 = smov 128   ;;  %s3775_s18 = smov 8  }
  0x3f   : > { %3176 = dma.hbm_to_vmem [thread:$0]  (!%p3869_p11), %s4870_s3, 4096, %s3873_s10, [#allocation8], %s3774_s17, %s3774_s17, %s3775_s18  }
  0x40   : > { %s3931_s26 = sadd.s32 1, %s3768_s24   ;;  %s34_s9 = sadd.s32 1, %s3764_s23 }
  0x41   : > { %s31_s30 = ssub.s32 %s3768_s24, %s3931_s26  ;;  %p41_p6 = scmp.ne.s32.totalorder %s3764_s23, %s3760_s22 }
  0x42   : > { %p32_p13 = scmp.eq.s32.totalorder %s31_s30, 0  ;;  %p42_p10 = scmp.eq.s32.totalorder %s3768_s24, 0 }
  0x43   : > { %p4885_p5 = scmp.eq.s32.totalorder %s3839_s25, 1  ;;  %p3190_p9 = scmp.lt.s32.totalorder %s3768_s24, 2 }
  0x44   : > { %s3940_s11 = scalar_select %p32_p13, %s3764_s23, %s34_s9  }
  0x45   : > { %p43_p3 = por %p42_p10, %p41_p6  ;;  %p3944_p7 = por %p4885_p5, %p41_p6 }
  0x46   : > { %s239_s12 = sand.u32 1, %s3764_s23   ;;  %s2961_s10 = sshll.u32 %s3768_s24, 11 }
  0x47   : > { %s4886_s8 = scalar_select %p3944_p7, 1, 0 }
  0x48   : > { %s2784_s13 = sshll.u32 %s239_s12, 7  ;;  %s3954_s16 = scalar_lea.hbm %s4867_s0, %s2961_s10 }
  0x49   : > { %s243_s7 = scalar_lea.vmem [#allocation4], %s2784_s13  ;;  %p3958_p11 = pnand %p3190_p9, %p43_p3 }
  0x4a   : > { %s250_s19 = sshll.u32 %s243_s7, 4  ;;  %s3962_s30 = scalar_lea.sflag [#allocation5], %s239_s12  ;;  %s3956_s19 = int_to_ptr.vmem [resolvable:$true] %s250_s19 }
  0x4b   : > { %s3636_s9 = scalar_lea.hbm %s3954_s16, 2048  ;;  %p3638_p0 = pneg %p3958_p11 }
  0x4c   : > { %p3637_p12 = scmp.ne.s32.totalorder %s3954_s16, %s3636_s9  ;;  %s3641_s14 = scalar_lea.hbm %s4867_s0, 4096 }
  0x4d   : > { %p3642_p13 = scmp.lt.u32.totalorder %s3954_s16, %s4867_s0  ;;  %p3643_p6 = scmp.lt.u32.totalorder %s3641_s14, %s3636_s9 }
  0x4e   : > { %p3639_p2 = pnand %p3638_p0, %p3637_p12  ;;  %p3645_p3 = scmp.lt.u32.totalorder %s3636_s9, %s3954_s16 }
  0x4f   : > { %p3644_p10 = por %p3643_p6, %p3642_p13 }
  0x50   : > { %p3640_p1 = pneg %p3639_p2 }
  0x51   : > { %p3646_p5 = por %p3645_p3, %p3644_p10 }
  0x53   : > { %p3647_p9 = pnand %p3646_p5, %p3640_p1 }
  0x55   : > { %3650 = shalt.err (!%p3647_p9)
}
  0x56   : > { %s3651_s12 = scalar_lea.vmem %s3956_s19, 2048  ;;  %s3776_s13 = smov [#allocation4]  }
  0x57   : > { %p3652_p12 = scmp.ne.s32.totalorder %s3956_s19, %s3651_s12  ;;  %s3656_s10 = sshll.u32 %s3776_s13, 4  ;;  %s3657_s10 = int_to_ptr.vmem [resolvable:$false] %s3656_s10 }
  0x58   : > { %s3658_s15 = scalar_lea.vmem %s3657_s10, 4096  ;;  %p3659_p4 = scmp.lt.s32.totalorder %s3956_s19, %s3657_s10 }
  0x59   : > { %p3654_p2 = pnand %p3652_p12, %p3638_p0  ;;  %p3660_p13 = scmp.lt.s32.totalorder %s3658_s15, %s3651_s12 }
  0x5b   : > { %p3655_p7 = pneg %p3654_p2  ;;  %p3661_p6 = por %p3660_p13, %p3659_p4 }
  0x5d   : > { %p3662_p10 = pnand %p3661_p6, %p3655_p7 }
  0x5f   : > { %3665 = shalt.err (!%p3662_p10)
}
  0x60   : > { %3180 = dma.hbm_to_vmem [thread:$0]  (!%p3958_p11), %s3954_s16, 2048, %s3956_s19, %s3962_s30, %s3774_s17, %s3774_s17, %s3775_s18  }
  0x61   : > { %262 = sbr.rel (%p3858_p8) target bundleno = 1596 (0x63c), region = 40 }
  0x68   : > { %s3996_s9 = sand.u32 1, %s3760_s22   ;;  %p4888_p4 = scmp.ne.s32.totalorder %s4881_s27, 0 }
  0x69   : > { %s2788_s14 = sshll.u32 %s3996_s9, 7  ;;  %s265_s7 = scalar_lea.sflag [#allocation5], %s3996_s9 }
  0x6a   : > { %s4000_s12 = scalar_lea.vmem [#allocation4], %s2788_s14 }
  0x6b   : > { %3739 = dma.done.wait (%p4888_p4), %s265_s7, 2048  }
  0x6c   : > { %3741 = vsyncadd (%p4888_p4), %s265_s7, 4294965248  ;;  %p4889_p7 = scmp.eq.s32.totalorder %s3839_s25, 0 }
  0x6e   : > { %3743 = dma.done.wait (%p4889_p7), [#allocation8], 16384   ;;  %p4890_p8 = pmov %p4889_p7 }
  0x6f   : > { %v3236_v0 = vld [vmem:[#allocation7 + $0x4] ss:$24 sps:$4 sm:$0xff]   ;;  %v3238_v1 = vld [vmem:[#allocation7] ss:$24 sps:$4 sm:$0xff]   ;;  %v3239_v2 = vld [vmem:[#allocation7 + $0x34] ss:$24 sps:$4 sm:$0xff]  }
  0x70   : > { %3745 = vsyncadd (%p4890_p8), [#allocation8], 4294950912  ;;  %1015 = vmatprep.subr.bf16.mxu1 %v3236_v0  ;;  %v3241_v3 = vld [vmem:[#allocation7 + $0x30] ss:$24 sps:$4 sm:$0xff]   ;;  %v3242_v4 = vld [vmem:[#allocation7 + $0x64] ss:$24 sps:$4 sm:$0xff]  }
  0x71   : > { %1016 = vmatpush1.bf16.msra.mxu1 %v3238_v1  ;;  %v3244_v5 = vld [vmem:[#allocation7 + $0x60] ss:$24 sps:$4 sm:$0xff]   ;;  %v3245_v6 = vld [vmem:[#allocation7 + $0x94] ss:$24 sps:$4 sm:$0xff]   ;;  %v3247_v7 = vld [vmem:[#allocation7 + $0x90] ss:$24 sps:$4 sm:$0xff]  }
  0x72   : > { %1017 = vmatprep.subr.bf16.mxu1 %v3239_v2  ;;  %v3248_v8 = vld [vmem:[#allocation7 + $0xc4] ss:$24 sps:$4 sm:$0xff]   ;;  %v3250_v9 = vld [vmem:[#allocation7 + $0xc0] ss:$24 sps:$4 sm:$0xff]   ;;  %v3251_v10 = vld [vmem:[#allocation7 + $0xf4] ss:$24 sps:$4 sm:$0xff]  }
  0x73   : > { %v3253_v11 = vld [vmem:[#allocation7 + $0xf0] ss:$24 sps:$4 sm:$0xff]   ;;  %v3254_v12 = vld [vmem:[#allocation7 + $0x124] ss:$24 sps:$4 sm:$0xff]   ;;  %v3256_v14 = vld [vmem:[#allocation7 + $0x120] ss:$24 sps:$4 sm:$0xff]  }
  0x74   : > { %v4011_v13 = vld [vmem:[%s4000_s12 + $0x4] ss:$8 sps:$4 sm:$0xff]   ;;  %v3259_v16 = vld [vmem:[#allocation7 + $0x150] ss:$24 sps:$4 sm:$0xff]   ;;  %v3262_v18 = vld [vmem:[#allocation7 + $0x180] ss:$24 sps:$4 sm:$0xff]  }
  0x75   : > { %1018 = vmatpush1.bf16.msra.mxu1 %v3241_v3  ;;  %v3257_v15 = vld [vmem:[#allocation7 + $0x154] ss:$24 sps:$4 sm:$0xff]   ;;  %1047 = vmatprep.mubr.bf16.mxu1 %v4011_v13  ;;  %v3260_v17 = vld [vmem:[#allocation7 + $0x184] ss:$24 sps:$4 sm:$0xff]   ;;  %v3265_v20 = vld [vmem:[#allocation7 + $0x1b0] ss:$24 sps:$4 sm:$0xff]  }
  0x76   : > { %1019 = vmatprep.subr.bf16.mxu1 %v3242_v4  ;;  %1273 = vmatprep.mubr.bf16.mxu0 %v4011_v13  ;;  %v3263_v19 = vld [vmem:[#allocation7 + $0x1b4] ss:$24 sps:$4 sm:$0xff]   ;;  %v3266_v21 = vld [vmem:[#allocation7 + $0x1e4] ss:$24 sps:$4 sm:$0xff]   ;;  %v3268_v22 = vld [vmem:[#allocation7 + $0x1e0] ss:$24 sps:$4 sm:$0xff]  }
  0x77   : > { %v3269_v23 = vld [vmem:[#allocation7 + $0x214] ss:$24 sps:$4 sm:$0xff]   ;;  %v3271_v24 = vld [vmem:[#allocation7 + $0x210] ss:$24 sps:$4 sm:$0xff]   ;;  %v3272_v25 = vld [vmem:[#allocation7 + $0x244] ss:$24 sps:$4 sm:$0xff]  }
  0x78   : > { %v3274_v26 = vld [vmem:[#allocation7 + $0x240] ss:$24 sps:$4 sm:$0xff]   ;;  %v3275_v27 = vld [vmem:[#allocation7 + $0x274] ss:$24 sps:$4 sm:$0xff]   ;;  %v3277_v28 = vld [vmem:[#allocation7 + $0x270] ss:$24 sps:$4 sm:$0xff]  }
  0x79   : > { %1020 = vmatpush1.bf16.msra.mxu1 %v3244_v5  ;;  %v3278_v29 = vld [vmem:[#allocation7 + $0x2a4] ss:$24 sps:$4 sm:$0xff]   ;;  %v3356_v30 = vld [vmem:[#allocation7 + $0x14] ss:$24 sps:$4 sm:$0xff]   ;;  %v3358_v31 = vld [vmem:[#allocation7 + $0x10] ss:$24 sps:$4 sm:$0xff]  }
  0x7a   : > { %1021 = vmatprep.subr.bf16.mxu1 %v3245_v6  ;;  %v3280_v32 = vld [vmem:[#allocation7 + $0x2a0] ss:$24 sps:$4 sm:$0xff]   ;;  %v3359_v33 = vld [vmem:[#allocation7 + $0x44] ss:$24 sps:$4 sm:$0xff]   ;;  %v3281_v34 = vld [vmem:[#allocation7 + $0x2d4] ss:$24 sps:$4 sm:$0xff]   ;;  %1241 = vmatprep.subr.bf16.mxu0 %v3356_v30 }
  0x7b   : > { %1242 = vmatpush1.bf16.msra.mxu0 %v3358_v31  ;;  %v3361_v35 = vld [vmem:[#allocation7 + $0x40] ss:$24 sps:$4 sm:$0xff]   ;;  %v3362_v36 = vld [vmem:[#allocation7 + $0x74] ss:$24 sps:$4 sm:$0xff]   ;;  %v3283_v37 = vld [vmem:[#allocation7 + $0x2d0] ss:$24 sps:$4 sm:$0xff]  }
  0x7c   : > { %1243 = vmatprep.subr.bf16.mxu0 %v3359_v33  ;;  %v3289_v38 = vld [vmem:[#allocation7 + $0xc] ss:$24 sps:$4 sm:$0xff]   ;;  %v3364_v39 = vld [vmem:[#allocation7 + $0x70] ss:$24 sps:$4 sm:$0xff]   ;;  %v4019_v43 = vld [vmem:[%s4000_s12 + $0x14] ss:$8 sps:$4 sm:$0xff]  }
  0x7d   : > { %1022 = vmatpush1.bf16.msra.mxu1 %v3247_v7  ;;  %v4016_v40 = vld [vmem:[%s4000_s12] ss:$8 sps:$4 sm:$0xff]   ;;  %v3365_v41 = vld [vmem:[#allocation7 + $0xa4] ss:$24 sps:$4 sm:$0xff]   ;;  %v3368_v46 = vld [vmem:[#allocation7 + $0xd4] ss:$24 sps:$4 sm:$0xff]  }
  0x7e   : > { %1023 = vmatprep.subr.bf16.mxu1 %v3248_v8  ;;  %v3287_v42 = vld [vmem:[#allocation7 + $0x8] ss:$24 sps:$4 sm:$0xff]   ;;  %v3292_v44 = vld [vmem:[#allocation7 + $0x3c] ss:$24 sps:$4 sm:$0xff]   ;;  %v3290_v47 = vld [vmem:[#allocation7 + $0x38] ss:$24 sps:$4 sm:$0xff]  }
  0x7f   : > { %1244 = vmatpush1.bf16.msra.mxu0 %v3361_v35  ;;  %v3367_v45 = vld [vmem:[#allocation7 + $0xa0] ss:$24 sps:$4 sm:$0xff]   ;;  %v3298_v48 = vld [vmem:[#allocation7 + $0x6c] ss:$24 sps:$4 sm:$0xff]   ;;  %v3370_v49 = vld [vmem:[#allocation7 + $0xd0] ss:$24 sps:$4 sm:$0xff]  }
  0x80   : > { %1245 = vmatprep.subr.bf16.mxu0 %v3362_v36  ;;  %v4024_v50 = vld [vmem:[%s4000_s12 + $0x10] ss:$8 sps:$4 sm:$0xff]   ;;  %v3371_v51 = vld [vmem:[#allocation7 + $0x104] ss:$24 sps:$4 sm:$0xff]   ;;  %v3296_v52 = vld [vmem:[#allocation7 + $0x68] ss:$24 sps:$4 sm:$0xff]  }
  0x81   : > { %1024 = vmatpush1.bf16.msra.mxu1 %v3250_v9  ;;  %v4027_v53 = vld [vmem:[%s4000_s12 + $0x24] ss:$8 sps:$4 sm:$0xff]   ;;  %v3301_v54 = vld [vmem:[#allocation7 + $0x9c] ss:$24 sps:$4 sm:$0xff]   ;;  %v3373_v55 = vld [vmem:[#allocation7 + $0x100] ss:$24 sps:$4 sm:$0xff]  }
  0x82   : > { %1025 = vmatprep.subr.bf16.mxu1 %v3251_v10  ;;  %v3299_v56 = vld [vmem:[#allocation7 + $0x98] ss:$24 sps:$4 sm:$0xff]   ;;  %v3307_v57 = vld [vmem:[#allocation7 + $0xcc] ss:$24 sps:$4 sm:$0xff]   ;;  %v4032_v60 = vld [vmem:[%s4000_s12 + $0x20] ss:$8 sps:$4 sm:$0xff]  }
  0x83   : > { %1246 = vmatpush1.bf16.msra.mxu0 %v3364_v39  ;;  %v3374_v58 = vld [vmem:[#allocation7 + $0x134] ss:$24 sps:$4 sm:$0xff]   ;;  %v3376_v59 = vld [vmem:[#allocation7 + $0x130] ss:$24 sps:$4 sm:$0xff]   ;;  %v3377_v61 = vld [vmem:[#allocation7 + $0x164] ss:$24 sps:$4 sm:$0xff]  }
  0x84   : > { %1247 = vmatprep.subr.bf16.mxu0 %v3365_v41  ;;  %v3305_v62 = vld [vmem:[#allocation7 + $0xc8] ss:$24 sps:$4 sm:$0xff]   ;;  %v4035_v63 = vld [vmem:[%s4000_s12 + $0x34] ss:$8 sps:$4 sm:$0xff]   ;;  %v3308_v3 = vld [vmem:[#allocation7 + $0xf8] ss:$24 sps:$4 sm:$0xff]  }
  0x85   : > { %1026 = vmatpush1.bf16.msra.mxu1 %v3253_v11  ;;  %v3310_v0 = vld [vmem:[#allocation7 + $0xfc] ss:$24 sps:$4 sm:$0xff]   ;;  %v3379_v1 = vld [vmem:[#allocation7 + $0x160] ss:$24 sps:$4 sm:$0xff]   ;;  %v3316_v4 = vld [vmem:[#allocation7 + $0x12c] ss:$24 sps:$4 sm:$0xff]  }
  0x86   : > { %1027 = vmatprep.subr.bf16.mxu1 %v3254_v12  ;;  %v3380_v2 = vld [vmem:[#allocation7 + $0x194] ss:$24 sps:$4 sm:$0xff]   ;;  %v3382_v5 = vld [vmem:[#allocation7 + $0x190] ss:$24 sps:$4 sm:$0xff]   ;;  %v3383_v7 = vld [vmem:[#allocation7 + $0x1c4] ss:$24 sps:$4 sm:$0xff]  }
  0x87   : > { %1248 = vmatpush1.bf16.msra.mxu0 %v3367_v45  ;;  %v4040_v6 = vld [vmem:[%s4000_s12 + $0x30] ss:$8 sps:$4 sm:$0xff]   ;;  %v3314_v8 = vld [vmem:[#allocation7 + $0x128] ss:$24 sps:$4 sm:$0xff]   ;;  %v4043_v9 = vld [vmem:[%s4000_s12 + $0x44] ss:$8 sps:$4 sm:$0xff]  }
  0x88   : > { %1249 = vmatprep.subr.bf16.mxu0 %v3368_v46  ;;  %v3319_v10 = vld [vmem:[#allocation7 + $0x15c] ss:$24 sps:$4 sm:$0xff]   ;;  %v3385_v11 = vld [vmem:[#allocation7 + $0x1c0] ss:$24 sps:$4 sm:$0xff]   ;;  %v4059_v30 = vld [vmem:[%s4000_s12 + $0x64] ss:$8 sps:$4 sm:$0xff]  }
  0x89   : > { %1028 = vmatpush1.bf16.msra.mxu1 %v3256_v14  ;;  %v3386_v12 = vld [vmem:[#allocation7 + $0x1f4] ss:$24 sps:$4 sm:$0xff]   ;;  %v3317_v14 = vld [vmem:[#allocation7 + $0x158] ss:$24 sps:$4 sm:$0xff]   ;;  %v3341_v39 = vld [vmem:[#allocation7 + $0x248] ss:$24 sps:$4 sm:$0xff]  }
  0x8a   : > { %1029 = vmatprep.subr.bf16.mxu1 %v3257_v15  ;;  %v3325_v15 = vld [vmem:[#allocation7 + $0x18c] ss:$24 sps:$4 sm:$0xff]   ;;  %v3337_v31 = vld [vmem:[#allocation7 + $0x21c] ss:$24 sps:$4 sm:$0xff]   ;;  %v3400_v36 = vld [vmem:[#allocation7 + $0x2b0] ss:$24 sps:$4 sm:$0xff]  }
  0x8b   : > { %1250 = vmatpush1.bf16.msra.mxu0 %v3370_v49  ;;  %v3398_v33 = vld [vmem:[#allocation7 + $0x2b4] ss:$24 sps:$4 sm:$0xff]   ;;  %v3344_v45 = vld [vmem:[#allocation7 + $0x278] ss:$24 sps:$4 sm:$0xff]   ;;  %s2791_s17 = sshll.u32 %s3996_s9, 8  ;;  %s2962_s16 = sshll.u32 %s3839_s25, 12 }
  0x8c   : > { %1251 = vmatprep.subr.bf16.mxu0 %v3371_v51  ;;  %v3343_v35 = vld [vmem:[#allocation7 + $0x24c] ss:$24 sps:$4 sm:$0xff]   ;;  %v3347_v41 = vld [vmem:[%s4000_s12 + $0x74] ss:$8 sps:$4 sm:$0xff]   ;;  %v3353_v51 = vld [vmem:[#allocation7 + $0x2d8] ss:$24 sps:$4 sm:$0xff]   ;;  %s4707_s30 = scalar_lea.hbm %s4873_s6, %s2962_s16 }
  0x8d   : > { %1030 = vmatpush1.bf16.msra.mxu1 %v3259_v16  ;;  %v3388_v16 = vld [vmem:[#allocation7 + $0x1f0] ss:$24 sps:$4 sm:$0xff]   ;;  %v3352_v46 = vld [vmem:[#allocation7 + $0x2ac] ss:$24 sps:$4 sm:$0xff]   ;;  %v3355_v49 = vld [vmem:[#allocation7 + $0x2dc] ss:$24 sps:$4 sm:$0xff]  }
  0x8e   : > { %1031 = vmatprep.subr.bf16.mxu1 %v3260_v17  ;;  %v4048_v17 = vld [vmem:[%s4000_s12 + $0x40] ss:$8 sps:$4 sm:$0xff]   ;;  %s4621_s18 = scalar_lea.vmem [#allocation11], %s2791_s17  ;;  %s2626_s10 = scalar_lea.sflag [#allocation12], %s3996_s9 }
  0x8f   : > { %1252 = vmatpush1.bf16.msra.mxu0 %v3373_v55  ;;  %s2655_s13 = sshll.u32 %s4621_s18, 4  ;;  %p4906_p0 = scmp.ne.s32.totalorder %s4886_s8, 0  ;;  %s4710_s13 = int_to_ptr.vmem [resolvable:$true] %s2655_s13 }
  0x90   : > { %1253 = vmatprep.subr.bf16.mxu0 %v3374_v58  ;;  %s3666_s15 = scalar_lea.vmem %s4710_s13, 4096  ;;  %s3777_s14 = smov [#allocation11]  }
  0x91   : > { %1032 = vmatpush1.bf16.msra.mxu1 %v3262_v18  ;;  %v3389_v18 = vld [vmem:[#allocation7 + $0x224] ss:$24 sps:$4 sm:$0xff]   ;;  %p3667_p11 = scmp.ne.s32.totalorder %s4710_s13, %s3666_s15  ;;  %s3670_s7 = sshll.u32 %s3777_s14, 4  ;;  %s3671_s7 = int_to_ptr.vmem [resolvable:$false] %s3670_s7 }
  0x92   : > { %1033 = vmatprep.subr.bf16.mxu1 %v3263_v19  ;;  %v3323_v19 = vld [vmem:[#allocation7 + $0x188] ss:$24 sps:$4 sm:$0xff]   ;;  %p3673_p5 = scmp.lt.s32.totalorder %s4710_s13, %s3671_s7 }
  0x93   : > { %1254 = vmatpush1.bf16.msra.mxu0 %v3376_v59  ;;  %p3668_p1 = pnand %p3667_p11, %p4906_p0 }
  0x94   : > { %1255 = vmatprep.subr.bf16.mxu0 %v3377_v61 }
  0x95   : > { %1034 = vmatpush1.bf16.msra.mxu1 %v3265_v20  ;;  %v4051_v20 = vld [vmem:[%s4000_s12 + $0x54] ss:$8 sps:$4 sm:$0xff]   ;;  %p3669_p3 = pneg %p3668_p1 }
  0x96   : > { %1035 = vmatprep.subr.bf16.mxu1 %v3266_v21  ;;  %v3328_v21 = vld [vmem:[#allocation7 + $0x1bc] ss:$24 sps:$4 sm:$0xff]  }
  0x97   : > { %1256 = vmatpush1.bf16.msra.mxu0 %v3379_v1 }
  0x98   : > { %1257 = vmatprep.subr.bf16.mxu0 %v3380_v2 }
  0x99   : > { %1036 = vmatpush1.bf16.msra.mxu1 %v3268_v22  ;;  %v3391_v22 = vld [vmem:[#allocation7 + $0x220] ss:$24 sps:$4 sm:$0xff]  }
  0x9a   : > { %1037 = vmatprep.subr.bf16.mxu1 %v3269_v23  ;;  %v3392_v23 = vld [vmem:[#allocation7 + $0x254] ss:$24 sps:$4 sm:$0xff]  }
  0x9b   : > { %1258 = vmatpush1.bf16.msra.mxu0 %v3382_v5 }
  0x9c   : > { %1259 = vmatprep.subr.bf16.mxu0 %v3383_v7 }
  0x9d   : > { %1038 = vmatpush1.bf16.msra.mxu1 %v3271_v24  ;;  %v3326_v24 = vld [vmem:[#allocation7 + $0x1b8] ss:$24 sps:$4 sm:$0xff]  }
  0x9e   : > { %1039 = vmatprep.subr.bf16.mxu1 %v3272_v25  ;;  %v3334_v25 = vld [vmem:[#allocation7 + $0x1ec] ss:$24 sps:$4 sm:$0xff]  }
  0x9f   : > { %1260 = vmatpush1.bf16.msra.mxu0 %v3385_v11 }
  0xa0   : > { %1261 = vmatprep.subr.bf16.mxu0 %v3386_v12 }
  0xa1   : > { %1040 = vmatpush1.bf16.msra.mxu1 %v3274_v26  ;;  %v3394_v26 = vld [vmem:[#allocation7 + $0x250] ss:$24 sps:$4 sm:$0xff]  }
  0xa2   : > { %1041 = vmatprep.subr.bf16.mxu1 %v3275_v27  ;;  %v4056_v27 = vld [vmem:[%s4000_s12 + $0x50] ss:$8 sps:$4 sm:$0xff]  }
  0xa3   : > { %1262 = vmatpush1.bf16.msra.mxu0 %v3388_v16 }
  0xa4   : > { %1263 = vmatprep.subr.bf16.mxu0 %v3389_v18 }
  0xa5   : > { %1042 = vmatpush1.bf16.msra.mxu1 %v3277_v28  ;;  %v3395_v28 = vld [vmem:[#allocation7 + $0x284] ss:$24 sps:$4 sm:$0xff]  }
  0xa6   : > { %1043 = vmatprep.subr.bf16.mxu1 %v3278_v29  ;;  %v3332_v29 = vld [vmem:[#allocation7 + $0x1e8] ss:$24 sps:$4 sm:$0xff]  }
  0xa7   : > { %1264 = vmatpush1.bf16.msra.mxu0 %v3391_v22 }
  0xa8   : > { %1265 = vmatprep.subr.bf16.mxu0 %v3392_v23 }
  0xa9   : > { %1044 = vmatpush1.bf16.msra.mxu1 %v3280_v32  ;;  %v3397_v32 = vld [vmem:[#allocation7 + $0x280] ss:$24 sps:$4 sm:$0xff]  }
  0xaa   : > { %1045 = vmatprep.subr.bf16.mxu1 %v3281_v34  ;;  %v3335_v34 = vld [vmem:[#allocation7 + $0x218] ss:$24 sps:$4 sm:$0xff]  }
  0xab   : > { %1266 = vmatpush1.bf16.msra.mxu0 %v3394_v26 }
  0xac   : > { %1267 = vmatprep.subr.bf16.mxu0 %v3395_v28 }
  0xad   : > { %1046 = vmatpush1.bf16.msra.mxu1 %v3283_v37  ;;  %v3340_v37 = vld [vmem:[%s4000_s12 + $0x60] ss:$8 sps:$4 sm:$0xff]  }
  0xae   : > { %1128 = vmatprep.subr.bf16.mxu1 %v3289_v38  ;;  %v3401_v38 = vld [vmem:[#allocation7 + $0x2e4] ss:$24 sps:$4 sm:$0xff]  }
  0xaf   : > { %1268 = vmatpush1.bf16.msra.mxu0 %v3397_v32 }
  0xb0   : > { %1048 = vmatmul.mubr.bf16.vlgmr.msra.gmra.mrb[0].mxu1 %v4016_v40  ;;  %1269 = vmatprep.subr.bf16.mxu0 %v3398_v33 }
  0xb1   : > { %1129 = vmatpush1.bf16.msra.mxu1 %v3287_v42  ;;  %1057 = vmatprep.mubr.bf16.mxu1 %v4019_v43  ;;  %v3346_v42 = vld [vmem:[#allocation7 + $0x27c] ss:$24 sps:$4 sm:$0xff]  }
  0xb2   : > { %1130 = vmatprep.subr.bf16.mxu1 %v3292_v44  ;;  %v3403_v44 = vld [vmem:[#allocation7 + $0x2e0] ss:$24 sps:$4 sm:$0xff]  }
  0xb3   : > { %1270 = vmatpush1.bf16.msra.mxu0 %v3400_v36 }
  0xb4   : > { %1271 = vmatprep.subr.bf16.mxu0 %v3401_v38 }
  0xb5   : > { %1131 = vmatpush1.bf16.msra.mxu1 %v3290_v47  ;;  %v3349_v47 = vld [vmem:[%s4000_s12 + $0x70] ss:$8 sps:$4 sm:$0xff]   ;;  %s3672_s12 = scalar_lea.vmem %s3671_s7, 8192 }
  0xb6   : > { %1132 = vmatprep.subr.bf16.mxu1 %v3298_v48  ;;  %v3350_v48 = vld [vmem:[#allocation7 + $0x2a8] ss:$24 sps:$4 sm:$0xff]   ;;  %p3674_p9 = scmp.lt.s32.totalorder %s3672_s12, %s3666_s15 }
  0xb7   : > { %1272 = vmatpush1.bf16.msra.mxu0 %v3403_v44 }
  0xb8   : > { %1058 = vmatmul.mubr.bf16.gmra.mrb[4].mxu1 %v4024_v50  ;;  %p3675_p12 = por %p3674_p9, %p3673_p5 }
  0xb9   : > { %1133 = vmatpush1.bf16.msra.mxu1 %v3296_v52  ;;  %1067 = vmatprep.mubr.bf16.mxu1 %v4027_v53 }
  0xba   : > { %1134 = vmatprep.subr.bf16.mxu1 %v3301_v54  ;;  %1274 = vmatmul.mubr.bf16.vlgmr.msra.gmra.mrb[0].mxu0 %v4016_v40  ;;  %p3676_p2 = pnand %p3675_p12, %p3669_p3 }
  0xbb   : > { %1283 = vmatprep.mubr.bf16.mxu0 %v4019_v43 }
  0xbd   : > { %1135 = vmatpush1.bf16.msra.mxu1 %v3299_v56 }
  0xbe   : > { %1136 = vmatprep.subr.bf16.mxu1 %v3307_v57 }
  0xc0   : > { %1068 = vmatmul.mubr.bf16.gmra.mrb[8].mxu1 %v4032_v60 }
  0xc1   : > { %1137 = vmatpush1.bf16.msra.mxu1 %v3305_v62  ;;  %1077 = vmatprep.mubr.bf16.mxu1 %v4035_v63 }
  0xc2   : > { %1138 = vmatprep.subr.bf16.mxu1 %v3310_v0  ;;  %1284 = vmatmul.mubr.bf16.gmra.mrb[4].mxu0 %v4024_v50 }
  0xc3   : > { %1293 = vmatprep.mubr.bf16.mxu0 %v4027_v53 }
  0xc5   : > { %1139 = vmatpush1.bf16.msra.mxu1 %v3308_v3 }
  0xc6   : > { %1140 = vmatprep.subr.bf16.mxu1 %v3316_v4 }
  0xc8   : > { %1078 = vmatmul.mubr.bf16.gmra.mrb[12].mxu1 %v4040_v6 }
  0xc9   : > { %1141 = vmatpush1.bf16.msra.mxu1 %v3314_v8  ;;  %1087 = vmatprep.mubr.bf16.mxu1 %v4043_v9 }
  0xca   : > { %1142 = vmatprep.subr.bf16.mxu1 %v3319_v10  ;;  %1294 = vmatmul.mubr.bf16.gmra.mrb[8].mxu0 %v4032_v60 }
  0xcb   : > { %1303 = vmatprep.mubr.bf16.mxu0 %v4035_v63 }
  0xcd   : > { %1143 = vmatpush1.bf16.msra.mxu1 %v3317_v14 }
  0xce   : > { %1144 = vmatprep.subr.bf16.mxu1 %v3325_v15 }
  0xd0   : > { %1088 = vmatmul.mubr.bf16.gmra.mrb[16].mxu1 %v4048_v17 }
  0xd1   : > { %1145 = vmatpush1.bf16.msra.mxu1 %v3323_v19  ;;  %1097 = vmatprep.mubr.bf16.mxu1 %v4051_v20 }
  0xd2   : > { %1146 = vmatprep.subr.bf16.mxu1 %v3328_v21  ;;  %1304 = vmatmul.mubr.bf16.gmra.mrb[12].mxu0 %v4040_v6 }
  0xd3   : > { %1313 = vmatprep.mubr.bf16.mxu0 %v4043_v9 }
  0xd5   : > { %1147 = vmatpush1.bf16.msra.mxu1 %v3326_v24 }
  0xd6   : > { %1148 = vmatprep.subr.bf16.mxu1 %v3334_v25 }
  0xd8   : > { %1098 = vmatmul.mubr.bf16.gmra.mrb[20].mxu1 %v4056_v27 }
  0xd9   : > { %1149 = vmatpush1.bf16.msra.mxu1 %v3332_v29  ;;  %1107 = vmatprep.mubr.bf16.mxu1 %v4059_v30 }
  0xda   : > { %1150 = vmatprep.subr.bf16.mxu1 %v3337_v31  ;;  %1314 = vmatmul.mubr.bf16.gmra.mrb[16].mxu0 %v4048_v17 }
  0xdb   : > { %1323 = vmatprep.mubr.bf16.mxu0 %v4051_v20 }
  0xdd   : > { %1151 = vmatpush1.bf16.msra.mxu1 %v3335_v34 }
  0xde   : > { %1152 = vmatprep.subr.bf16.mxu1 %v3343_v35 }
  0xe0   : > { %1108 = vmatmul.mubr.bf16.gmra.mrb[24].mxu1 %v3340_v37 }
  0xe1   : > { %1153 = vmatpush1.bf16.msra.mxu1 %v3341_v39  ;;  %1117 = vmatprep.mubr.bf16.mxu1 %v3347_v41 }
  0xe2   : > { %1154 = vmatprep.subr.bf16.mxu1 %v3346_v42  ;;  %1324 = vmatmul.mubr.bf16.gmra.mrb[20].mxu0 %v4056_v27 }
  0xe3   : > { %1333 = vmatprep.mubr.bf16.mxu0 %v4059_v30 }
  0xe5   : > { %1155 = vmatpush1.bf16.msra.mxu1 %v3344_v45 }
  0xe6   : > { %1156 = vmatprep.subr.bf16.mxu1 %v3352_v46 }
  0xe8   : > { %1118 = vmatmul.mubr.bf16.gmra.mrb[28].mxu1 %v3349_v47 }
  0xe9   : > { %1157 = vmatpush1.bf16.msra.mxu1 %v3350_v48  ;;  %1160 = vmatprep.mubr.bf16.mxu1 %v4011_v13  ;;  %v425_v13 = vlaneseq }
  0xea   : > { %1158 = vmatprep.subr.bf16.mxu1 %v3355_v49  ;;  %1334 = vmatmul.mubr.bf16.gmra.mrb[24].mxu0 %v3340_v37 }
  0xeb   : > { %1343 = vmatprep.mubr.bf16.mxu0 %v3347_v41 }
  0xed   : > { %1159 = vmatpush1.bf16.msra.mxu1 %v3353_v51 }
  0xf0   : > { %1161 = vmatmul.mubr.bf16.vlgmr.msra.gmra.mrb[32].mxu1 %v4016_v40  ;;  %v4091_v40 = vshrl.u32 %v425_v13, 7 }
  0xf1   : > { %1170 = vmatprep.mubr.bf16.mxu1 %v4019_v43 }
  0xf2   : > { %1344 = vmatmul.mubr.bf16.gmra.mrb[28].mxu0 %v3349_v47  ;;  %4891 = vst [vmem:[#allocation17_spill] sm:$0xff] %v4091_v40  ;;  %v4878_v43 = vsub.s32 0, %v4091_v40  ;;  %v4877_v52 = vsub.s32 1, %v4091_v40 }
  0xf8   : > { %1171 = vmatmul.mubr.bf16.gmra.mrb[36].mxu1 %v4024_v50  ;;  %v4097_v50 = vld [vmem:[%s4869_s2] sm:$0x3f] }
  0xf9   : > { %1180 = vmatprep.mubr.bf16.mxu1 %v4027_v53  ;;  %v4103_v53 = vrot.slane %v4097_v50, %v4878_v43  ;;  %v4108_v55 = vrot.slane %v4097_v50, %v4877_v52 }
 0x100   : > { %1181 = vmatmul.mubr.bf16.gmra.mrb[40].mxu1 %v4032_v60 }
 0x101   : > { %1190 = vmatprep.mubr.bf16.mxu1 %v4035_v63 }
 0x108   : > { %1191 = vmatmul.mubr.bf16.gmra.mrb[44].mxu1 %v4040_v6 }
 0x109   : > { %1200 = vmatprep.mubr.bf16.mxu1 %v4043_v9 }
 0x110   : > { %1201 = vmatmul.mubr.bf16.gmra.mrb[48].mxu1 %v4048_v17 }
 0x111   : > { %1210 = vmatprep.mubr.bf16.mxu1 %v4051_v20 }
 0x118   : > { %1211 = vmatmul.mubr.bf16.gmra.mrb[52].mxu1 %v4056_v27 }
 0x119   : > { %1220 = vmatprep.mubr.bf16.mxu1 %v4059_v30 }
 0x120   : > { %1221 = vmatmul.mubr.bf16.gmra.mrb[56].mxu1 %v3340_v37 }
 0x121   : > { %1230 = vmatprep.mubr.bf16.mxu1 %v3347_v41 }
 0x128   : > { %1231 = vmatmul.mubr.bf16.gmra.mrb[60].mxu1 %v3349_v47 }
 0x183   : > { %v1049_v54 = vpop.f32.mrb[0].mxu1 }
 0x184   : > { %v1051_v56 = vpop.f32.mrb[1].mxu1  ;;  %v1050_v58 = vadd.f32 %v1049_v54, %v4103_v53 }
 0x185   : > { %v1053_v57 = vpop.f32.mrb[2].mxu1  ;;  %v1052_v61 = vadd.f32 %v1051_v56, %v4108_v55 }
 0x186   : > { %v1054_v59 = vadd.f32 %v1053_v57, %v4103_v53  ;;  %v1055_v60 = vpop.f32.mrb[3].mxu1  ;;  %v443_v57 = vsub.s32 4, %v4091_v40 }
 0x187   : > { %v1056_v62 = vadd.f32 %v1055_v60, %v4108_v55 }
 0x188   : > { %v1354_v63 = vpack.c.bf16 %v1054_v59, %v1050_v58  ;;  %v447_v59 = vsub.s32 5, %v4091_v40 }
 0x189   : > { %v1355_v0 = vpack.c.bf16 %v1056_v62, %v1052_v61 }
 0x18a   : > { %3044 = vmatprep.mubr.bf16.mxu1 %v1354_v63 }
 0x18b   : > { %v1059_v1 = vpop.f32.mrb[4].mxu1  ;;  %3108 = vmatprep.mubr.bf16.mxu0 %v1355_v0 }
 0x18c   : > { %v4115_v2 = vadd.f32 %v1059_v1, %v4103_v53  ;;  %v1061_v3 = vpop.f32.mrb[5].mxu1 }
 0x18d   : > { %v4118_v4 = vadd.f32 %v1061_v3, %v4108_v55  ;;  %v1063_v5 = vpop.f32.mrb[6].mxu1  ;;  %v4206_v3 = vrot.slane %v4097_v50, %v443_v57 }
 0x18e   : > { %v4121_v6 = vadd.f32 %v1063_v5, %v4103_v53  ;;  %v1065_v7 = vpop.f32.mrb[7].mxu1 }
 0x18f   : > { %v4124_v8 = vadd.f32 %v1065_v7, %v4108_v55  ;;  %v4212_v7 = vrot.slane %v4097_v50, %v447_v59 }
 0x193   : > { %v1069_v11 = vpop.f32.mrb[8].mxu1 }
 0x194   : > { %v4131_v12 = vadd.f32 %v1069_v11, %v4103_v53  ;;  %v1071_v14 = vpop.f32.mrb[9].mxu1 }
 0x195   : > { %v4134_v15 = vadd.f32 %v1071_v14, %v4108_v55  ;;  %v1073_v16 = vpop.f32.mrb[10].mxu1 }
 0x196   : > { %v4137_v17 = vadd.f32 %v1073_v16, %v4103_v53  ;;  %v1075_v18 = vpop.f32.mrb[11].mxu1  ;;  %v1275_v16 = vpop.f32.mrb[0].mxu0 }
 0x197   : > { %v4140_v19 = vadd.f32 %v1075_v18, %v4108_v55  ;;  %v1276_v18 = vadd.f32 %v1275_v16, %v4206_v3 }
 0x19b   : > { %v1079_v22 = vpop.f32.mrb[12].mxu1 }
 0x19c   : > { %v4147_v23 = vadd.f32 %v1079_v22, %v4103_v53  ;;  %v1081_v24 = vpop.f32.mrb[13].mxu1  ;;  %v1277_v22 = vpop.f32.mrb[1].mxu0 }
 0x19d   : > { %v4150_v25 = vadd.f32 %v1081_v24, %v4108_v55  ;;  %v1083_v26 = vpop.f32.mrb[14].mxu1 }
 0x19e   : > { %v4153_v27 = vadd.f32 %v1083_v26, %v4103_v53  ;;  %v1085_v28 = vpop.f32.mrb[15].mxu1  ;;  %v1278_v26 = vadd.f32 %v1277_v22, %v4212_v7 }
 0x19f   : > { %v4156_v29 = vadd.f32 %v1085_v28, %v4108_v55  ;;  %v1279_v28 = vpop.f32.mrb[2].mxu0 }
 0x1a3   : > { %v1089_v32 = vpop.f32.mrb[16].mxu1 }
 0x1a4   : > { %v4163_v33 = vadd.f32 %v1089_v32, %v4103_v53  ;;  %v1091_v34 = vpop.f32.mrb[17].mxu1 }
 0x1a5   : > { %v4166_v35 = vadd.f32 %v1091_v34, %v4108_v55  ;;  %v1093_v36 = vpop.f32.mrb[18].mxu1 }
 0x1a6   : > { %v4169_v37 = vadd.f32 %v1093_v36, %v4103_v53  ;;  %v1095_v38 = vpop.f32.mrb[19].mxu1  ;;  %v1280_v36 = vadd.f32 %v1279_v28, %v4206_v3 }
 0x1a7   : > { %v4172_v39 = vadd.f32 %v1095_v38, %v4108_v55  ;;  %v1281_v38 = vpop.f32.mrb[3].mxu0 }
 0x1a8   : > { %v4232_v59 = vpack.c.bf16 %v1280_v36, %v1276_v18 }
 0x1ab   : > { %v1099_v44 = vpop.f32.mrb[20].mxu1 }
 0x1ac   : > { %v4179_v45 = vadd.f32 %v1099_v44, %v4103_v53  ;;  %v1101_v46 = vpop.f32.mrb[21].mxu1 }
 0x1ad   : > { %v4182_v47 = vadd.f32 %v1101_v46, %v4108_v55  ;;  %v1103_v48 = vpop.f32.mrb[22].mxu1 }
 0x1ae   : > { %v4185_v49 = vadd.f32 %v1103_v48, %v4103_v53  ;;  %v1105_v51 = vpop.f32.mrb[23].mxu1  ;;  %v1282_v48 = vadd.f32 %v1281_v38, %v4212_v7 }
 0x1af   : > { %v4188_v13 = vadd.f32 %v1105_v51, %v4108_v55 }
 0x1b3   : > { %v1109_v58 = vpop.f32.mrb[24].mxu1 }
 0x1b4   : > { %v4197_v60 = vadd.f32 %v1109_v58, %v4103_v53  ;;  %v1111_v61 = vpop.f32.mrb[25].mxu1  ;;  %v435_v58 = vsub.s32 2, %v4091_v40 }
 0x1b5   : > { %v4200_v62 = vadd.f32 %v1111_v61, %v4108_v55  ;;  %v1113_v63 = vpop.f32.mrb[26].mxu1 }
 0x1b6   : > { %v4203_v0 = vadd.f32 %v1113_v63, %v4103_v53  ;;  %v1115_v1 = vpop.f32.mrb[27].mxu1  ;;  %v439_v63 = vsub.s32 3, %v4091_v40 }
 0x1b7   : > { %v4209_v5 = vadd.f32 %v1115_v1, %v4108_v55  ;;  %v4238_v1 = vpack.c.bf16 %v1282_v48, %v1278_v26 }
 0x1bb   : > { %v1119_v24 = vpop.f32.mrb[28].mxu1 }
 0x1bc   : > { %v4221_v32 = vadd.f32 %v1119_v24, %v4103_v53  ;;  %v1121_v34 = vpop.f32.mrb[29].mxu1  ;;  %v4245_v24 = vrot.slane %v4097_v50, %v435_v58 }
 0x1bd   : > { %v4225_v44 = vadd.f32 %v1121_v34, %v4108_v55  ;;  %v1123_v46 = vpop.f32.mrb[30].mxu1 }
 0x1be   : > { %v4229_v51 = vadd.f32 %v1123_v46, %v4103_v53  ;;  %v1125_v57 = vpop.f32.mrb[31].mxu1  ;;  %v1285_v53 = vpop.f32.mrb[4].mxu0 }
 0x1bf   : > { %v4235_v61 = vadd.f32 %v1125_v57, %v4108_v55  ;;  %v1286_v18 = vadd.f32 %v1285_v53, %v4206_v3  ;;  %v1287_v28 = vpop.f32.mrb[5].mxu0  ;;  %v4249_v55 = vrot.slane %v4097_v50, %v439_v63 }
 0x1c0   : > { %v1288_v26 = vadd.f32 %v1287_v28, %v4212_v7  ;;  %v1289_v36 = vpop.f32.mrb[6].mxu0 }
 0x1c1   : > { %v1290_v46 = vadd.f32 %v1289_v36, %v4206_v3  ;;  %v1291_v48 = vpop.f32.mrb[7].mxu0 }
 0x1c2   : > { %v1292_v52 = vadd.f32 %v1291_v48, %v4212_v7  ;;  %v1295_v36 = vpop.f32.mrb[8].mxu0 }
 0x1c3   : > { %v1162_v34 = vpop.f32.mrb[32].mxu1  ;;  %v4256_v22 = vpack.c.bf16 %v1290_v46, %v1286_v18  ;;  %v1296_v56 = vadd.f32 %v1295_v36, %v4206_v3  ;;  %v1297_v48 = vpop.f32.mrb[9].mxu0 }
 0x1c4   : > { %v1164_v38 = vpop.f32.mrb[33].mxu1  ;;  %v1163_v58 = vadd.f32 %v1162_v34, %v4245_v24  ;;  %v4260_v28 = vpack.c.bf16 %v1292_v52, %v1288_v26  ;;  %v1298_v34 = vadd.f32 %v1297_v48, %v4212_v7  ;;  %v1299_v18 = vpop.f32.mrb[10].mxu0 }
 0x1c5   : > { %v1166_v57 = vpop.f32.mrb[34].mxu1  ;;  %v1165_v50 = vadd.f32 %v1164_v38, %v4249_v55  ;;  %v1300_v38 = vadd.f32 %v1299_v18, %v4206_v3 }
 0x1c6   : > { %v1167_v43 = vadd.f32 %v1166_v57, %v4245_v24  ;;  %v1168_v53 = vpop.f32.mrb[35].mxu1  ;;  %v1301_v57 = vpop.f32.mrb[11].mxu0 }
 0x1c7   : > { %v1169_v63 = vadd.f32 %v1168_v53, %v4249_v55  ;;  %v1305_v18 = vpop.f32.mrb[12].mxu0 }
 0x1c8   : > { %v1356_v16 = vpack.c.bf16 %v1167_v43, %v1163_v58  ;;  %v1302_v43 = vadd.f32 %v1301_v57, %v4212_v7  ;;  %v1306_v54 = vadd.f32 %v1305_v18, %v4206_v3  ;;  %v1307_v57 = vpop.f32.mrb[13].mxu0 }
 0x1c9   : > { %v1357_v14 = vpack.c.bf16 %v1169_v63, %v1165_v50  ;;  %v4268_v50 = vpack.c.bf16 %v1300_v38, %v1296_v56  ;;  %v1309_v56 = vpop.f32.mrb[14].mxu0 }
 0x1ca   : > { %3028 = vmatprep.subr.bf16.mxu1 %v1356_v16  ;;  %v4272_v36 = vpack.c.bf16 %v1302_v43, %v1298_v34 }
 0x1cb   : > { %v1172_v11 = vpop.f32.mrb[36].mxu1  ;;  %3029 = vmatpush3.bf16.xpose.msra.mxu1 %v1356_v16  ;;  %3092 = vmatprep.subr.bf16.mxu0 %v1357_v14 }
 0x1cc   : > { %v1174_v46 = vpop.f32.mrb[37].mxu1  ;;  %3093 = vmatpush3.bf16.xpose.msra.mxu0 %v1357_v14  ;;  %v1173_v26 = vadd.f32 %v1172_v11, %v4245_v24  ;;  %v1308_v11 = vadd.f32 %v1307_v57, %v4212_v7 }
 0x1cd   : > { %v1176_v52 = vpop.f32.mrb[38].mxu1  ;;  %v1175_v16 = vadd.f32 %v1174_v46, %v4249_v55  ;;  %v1310_v46 = vadd.f32 %v1309_v56, %v4206_v3 }
 0x1ce   : > { %v1177_v58 = vadd.f32 %v1176_v52, %v4245_v24  ;;  %v1178_v53 = vpop.f32.mrb[39].mxu1  ;;  %v1311_v52 = vpop.f32.mrb[15].mxu0 }
 0x1cf   : > { %v1179_v63 = vadd.f32 %v1178_v53, %v4249_v55  ;;  %v1312_v43 = vadd.f32 %v1311_v52, %v4212_v7  ;;  %v1315_v56 = vpop.f32.mrb[16].mxu0 }
 0x1d0   : > { %v1362_v14 = vpack.c.bf16 %v1177_v58, %v1173_v26  ;;  %v1316_v31 = vadd.f32 %v1315_v56, %v4206_v3  ;;  %v1317_v52 = vpop.f32.mrb[17].mxu0 }
 0x1d1   : > { %v1363_v48 = vpack.c.bf16 %v1179_v63, %v1175_v16  ;;  %v4280_v16 = vpack.c.bf16 %v1310_v46, %v1306_v54  ;;  %v4284_v18 = vpack.c.bf16 %v1312_v43, %v1308_v11  ;;  %v1319_v54 = vpop.f32.mrb[18].mxu0 }
 0x1d2   : > { %3030 = vmatprep.subr.bf16.mxu1 %v1362_v14 }
 0x1d3   : > { %v1182_v42 = vpop.f32.mrb[40].mxu1  ;;  %3031 = vmatpush3.bf16.xpose.msra.mxu1 %v1362_v14  ;;  %3094 = vmatprep.subr.bf16.mxu0 %v1363_v48 }
 0x1d4   : > { %v1184_v38 = vpop.f32.mrb[41].mxu1  ;;  %3095 = vmatpush3.bf16.xpose.msra.mxu0 %v1363_v48  ;;  %v1183_v26 = vadd.f32 %v1182_v42, %v4245_v24  ;;  %v1318_v42 = vadd.f32 %v1317_v52, %v4212_v7 }
 0x1d5   : > { %v1186_v34 = vpop.f32.mrb[42].mxu1  ;;  %v1185_v63 = vadd.f32 %v1184_v38, %v4249_v55  ;;  %v1320_v38 = vadd.f32 %v1319_v54, %v4206_v3 }
 0x1d6   : > { %v1187_v58 = vadd.f32 %v1186_v34, %v4245_v24  ;;  %v1188_v53 = vpop.f32.mrb[43].mxu1  ;;  %v1321_v34 = vpop.f32.mrb[19].mxu0 }
 0x1d7   : > { %v1189_v14 = vadd.f32 %v1188_v53, %v4249_v55  ;;  %v1322_v43 = vadd.f32 %v1321_v34, %v4212_v7  ;;  %v1325_v54 = vpop.f32.mrb[20].mxu0 }
 0x1d8   : > { %v1368_v48 = vpack.c.bf16 %v1187_v58, %v1183_v26  ;;  %v1326_v30 = vadd.f32 %v1325_v54, %v4206_v3  ;;  %v1327_v34 = vpop.f32.mrb[21].mxu0 }
 0x1d9   : > { %v1369_v57 = vpack.c.bf16 %v1189_v14, %v1185_v63  ;;  %v4292_v63 = vpack.c.bf16 %v1320_v38, %v1316_v31  ;;  %v4296_v56 = vpack.c.bf16 %v1322_v43, %v1318_v42  ;;  %v1329_v31 = vpop.f32.mrb[22].mxu0 }
 0x1da   : > { %3032 = vmatprep.subr.bf16.mxu1 %v1368_v48 }
 0x1db   : > { %v1192_v41 = vpop.f32.mrb[44].mxu1  ;;  %3033 = vmatpush3.bf16.xpose.msra.mxu1 %v1368_v48  ;;  %3096 = vmatprep.subr.bf16.mxu0 %v1369_v57 }
 0x1dc   : > { %v1194_v46 = vpop.f32.mrb[45].mxu1  ;;  %3097 = vmatpush3.bf16.xpose.msra.mxu0 %v1369_v57  ;;  %v1193_v26 = vadd.f32 %v1192_v41, %v4245_v24  ;;  %v1328_v41 = vadd.f32 %v1327_v34, %v4212_v7 }
 0x1dd   : > { %v1196_v11 = vpop.f32.mrb[46].mxu1  ;;  %v1195_v14 = vadd.f32 %v1194_v46, %v4249_v55  ;;  %v1330_v46 = vadd.f32 %v1329_v31, %v4206_v3 }
 0x1de   : > { %v1197_v58 = vadd.f32 %v1196_v11, %v4245_v24  ;;  %v1198_v53 = vpop.f32.mrb[47].mxu1  ;;  %v1331_v11 = vpop.f32.mrb[23].mxu0 }
 0x1df   : > { %v1199_v48 = vadd.f32 %v1198_v53, %v4249_v55  ;;  %v1332_v43 = vadd.f32 %v1331_v11, %v4212_v7  ;;  %v1335_v31 = vpop.f32.mrb[24].mxu0 }
 0x1e0   : > { %v1374_v57 = vpack.c.bf16 %v1197_v58, %v1193_v26  ;;  %v1336_v10 = vadd.f32 %v1335_v31, %v4206_v3  ;;  %v1337_v11 = vpop.f32.mrb[25].mxu0 }
 0x1e1   : > { %v1375_v52 = vpack.c.bf16 %v1199_v48, %v1195_v14  ;;  %v4304_v14 = vpack.c.bf16 %v1330_v46, %v1326_v30  ;;  %v4308_v54 = vpack.c.bf16 %v1332_v43, %v1328_v41  ;;  %v1339_v30 = vpop.f32.mrb[26].mxu0 }
 0x1e2   : > { %3034 = vmatprep.subr.bf16.mxu1 %v1374_v57 }
 0x1e3   : > { %v1202_v21 = vpop.f32.mrb[48].mxu1  ;;  %3035 = vmatpush3.bf16.xpose.msra.mxu1 %v1374_v57  ;;  %3098 = vmatprep.subr.bf16.mxu0 %v1375_v52 }
 0x1e4   : > { %v1204_v38 = vpop.f32.mrb[49].mxu1  ;;  %3099 = vmatpush3.bf16.xpose.msra.mxu0 %v1375_v52  ;;  %v1203_v26 = vadd.f32 %v1202_v21, %v4245_v24  ;;  %v1338_v21 = vadd.f32 %v1337_v11, %v4212_v7 }
 0x1e5   : > { %v1206_v42 = vpop.f32.mrb[50].mxu1  ;;  %v1205_v48 = vadd.f32 %v1204_v38, %v4249_v55  ;;  %v1340_v38 = vadd.f32 %v1339_v30, %v4206_v3 }
 0x1e6   : > { %v1207_v58 = vadd.f32 %v1206_v42, %v4245_v24  ;;  %v1208_v53 = vpop.f32.mrb[51].mxu1  ;;  %v1341_v42 = vpop.f32.mrb[27].mxu0 }
 0x1e7   : > { %v1209_v57 = vadd.f32 %v1208_v53, %v4249_v55  ;;  %v1342_v43 = vadd.f32 %v1341_v42, %v4212_v7  ;;  %v1345_v30 = vpop.f32.mrb[28].mxu0 }
 0x1e8   : > { %v1380_v52 = vpack.c.bf16 %v1207_v58, %v1203_v26  ;;  %v1346_v9 = vadd.f32 %v1345_v30, %v4206_v3  ;;  %v1347_v42 = vpop.f32.mrb[29].mxu0 }
 0x1e9   : > { %v1381_v34 = vpack.c.bf16 %v1209_v57, %v1205_v48  ;;  %v4316_v48 = vpack.c.bf16 %v1340_v38, %v1336_v10  ;;  %v4320_v31 = vpack.c.bf16 %v1342_v43, %v1338_v21  ;;  %v1349_v10 = vpop.f32.mrb[30].mxu0 }
 0x1ea   : > { %3036 = vmatprep.subr.bf16.mxu1 %v1380_v52 }
 0x1eb   : > { %v1212_v20 = vpop.f32.mrb[52].mxu1  ;;  %3037 = vmatpush3.bf16.xpose.msra.mxu1 %v1380_v52  ;;  %3100 = vmatprep.subr.bf16.mxu0 %v1381_v34 }
 0x1ec   : > { %v1214_v46 = vpop.f32.mrb[53].mxu1  ;;  %3101 = vmatpush3.bf16.xpose.msra.mxu0 %v1381_v34  ;;  %v1213_v26 = vadd.f32 %v1212_v20, %v4245_v24  ;;  %v1348_v20 = vadd.f32 %v1347_v42, %v4212_v7 }
 0x1ed   : > { %v1216_v41 = vpop.f32.mrb[54].mxu1  ;;  %v1215_v57 = vadd.f32 %v1214_v46, %v4249_v55  ;;  %v1350_v46 = vadd.f32 %v1349_v10, %v4206_v3 }
 0x1ee   : > { %v1217_v58 = vadd.f32 %v1216_v41, %v4245_v24  ;;  %v1218_v53 = vpop.f32.mrb[55].mxu1  ;;  %v1351_v41 = vpop.f32.mrb[31].mxu0 }
 0x1ef   : > { %v1219_v52 = vadd.f32 %v1218_v53, %v4249_v55  ;;  %v1352_v43 = vadd.f32 %v1351_v41, %v4212_v7 }
 0x1f0   : > { %v1386_v34 = vpack.c.bf16 %v1217_v58, %v1213_v26 }
 0x1f1   : > { %v1387_v11 = vpack.c.bf16 %v1219_v52, %v1215_v57  ;;  %v1400_v57 = vpack.c.bf16 %v1350_v46, %v1346_v9  ;;  %v4330_v30 = vpack.c.bf16 %v1352_v43, %v1348_v20  ;;  %v4892_v43 = vpack.c.bf16 %v4121_v6, %v4115_v2 }
 0x1f2   : > { %3038 = vmatprep.subr.bf16.mxu1 %v1386_v34  ;;  %v4896_v2 = vpack.c.bf16 %v4153_v27, %v4147_v23  ;;  %v4898_v6 = vpack.c.bf16 %v4156_v29, %v4150_v25  ;;  %v4904_v23 = vpack.c.bf16 %v4229_v51, %v4221_v32  ;;  %v4905_v25 = vpack.c.bf16 %v4235_v61, %v4225_v44 }
 0x1f3   : > { %v1222_v40 = vpop.f32.mrb[56].mxu1  ;;  %3039 = vmatpush3.bf16.xpose.msra.mxu1 %v1386_v34  ;;  %3102 = vmatprep.subr.bf16.mxu0 %v1387_v11 }
 0x1f4   : > { %v1224_v38 = vpop.f32.mrb[57].mxu1  ;;  %3103 = vmatpush3.bf16.xpose.msra.mxu0 %v1387_v11  ;;  %v1223_v26 = vadd.f32 %v1222_v40, %v4245_v24 }
 0x1f5   : > { %v1226_v21 = vpop.f32.mrb[58].mxu1  ;;  %v1225_v52 = vadd.f32 %v1224_v38, %v4249_v55 }
 0x1f6   : > { %v1227_v58 = vadd.f32 %v1226_v21, %v4245_v24  ;;  %v1228_v53 = vpop.f32.mrb[59].mxu1 }
 0x1f7   : > { %v1229_v34 = vadd.f32 %v1228_v53, %v4249_v55 }
 0x1f8   : > { %v1392_v42 = vpack.c.bf16 %v1227_v58, %v1223_v26  ;;  %v4894_v26 = vpack.c.bf16 %v4124_v8, %v4118_v4  ;;  %v4897_v4 = vpack.c.bf16 %v4169_v37, %v4163_v33  ;;  %v4899_v8 = vpack.c.bf16 %v4172_v39, %v4166_v35 }
 0x1f9   : > { %v1393_v11 = vpack.c.bf16 %v1229_v34, %v1225_v52 }
 0x1fa   : > { %3040 = vmatprep.subr.bf16.mxu1 %v1392_v42 }
 0x1fb   : > { %v1232_v3 = vpop.f32.mrb[60].mxu1  ;;  %3041 = vmatpush3.bf16.xpose.msra.mxu1 %v1392_v42  ;;  %3104 = vmatprep.subr.bf16.mxu0 %v1393_v11 }
 0x1fc   : > { %v1234_v10 = vpop.f32.mrb[61].mxu1  ;;  %3105 = vmatpush3.bf16.xpose.msra.mxu0 %v1393_v11  ;;  %v1233_v40 = vadd.f32 %v1232_v3, %v4245_v24 }
 0x1fd   : > { %v1236_v7 = vpop.f32.mrb[62].mxu1  ;;  %v1235_v38 = vadd.f32 %v1234_v10, %v4249_v55 }
 0x1fe   : > { %v1237_v41 = vadd.f32 %v1236_v7, %v4245_v24  ;;  %v1238_v9 = vpop.f32.mrb[63].mxu1  ;;  %v4893_v24 = vpack.c.bf16 %v4137_v17, %v4131_v12  ;;  %v4900_v12 = vpack.c.bf16 %v4185_v49, %v4179_v45  ;;  %v4902_v17 = vpack.c.bf16 %v4188_v13, %v4182_v47 }
 0x1ff   : > { %v1239_v46 = vadd.f32 %v1238_v9, %v4249_v55  ;;  %v4895_v55 = vpack.c.bf16 %v4140_v19, %v4134_v15  ;;  %v4901_v15 = vpack.c.bf16 %v4203_v0, %v4197_v60  ;;  %v4903_v19 = vpack.c.bf16 %v4209_v5, %v4200_v62 }
 0x200   : > { %v1398_v20 = vpack.c.bf16 %v1237_v41, %v1233_v40 }
 0x201   : > { %v1399_v21 = vpack.c.bf16 %v1239_v46, %v1235_v38 }
 0x202   : > { %3042 = vmatprep.subr.bf16.mxu1 %v1398_v20 }
 0x203   : > { %3043 = vmatpush3.bf16.xpose.msra.mxu1 %v1398_v20  ;;  %3106 = vmatprep.subr.bf16.mxu0 %v1399_v21 }
 0x204   : > { %3107 = vmatpush3.bf16.xpose.msra.mxu0 %v1399_v21  ;;  %3060 = vmatprep.subr.bf16.mxu1 %v4232_v59 }
 0x20a   : > { %3045 = vmatmul.mubr.bf16.vlgmr.msra.gmra.mrb[64].mxu1 %v4892_v43 }
 0x20b   : > { %3048 = vmatprep.mubr.bf16.mxu1 %v4893_v24  ;;  %3109 = vmatmul.mubr.bf16.vlgmr.msra.gmra.mrb[32].mxu0 %v4894_v26 }
 0x20c   : > { %3112 = vmatprep.mubr.bf16.mxu0 %v4895_v55  ;;  %3061 = vmatpush3.bf16.msra.mxu1 %v4232_v59 }
 0x20d   : > { %3062 = vmatprep.subr.bf16.mxu1 %v4256_v22 }
 0x210   : > { %3063 = vmatpush3.bf16.msra.mxu1 %v4256_v22 }
 0x211   : > { %3064 = vmatprep.subr.bf16.mxu1 %v4268_v50 }
 0x212   : > { %3049 = vmatmul.mubr.bf16.gmra.mrb[68].mxu1 %v4896_v2 }
 0x213   : > { %3052 = vmatprep.mubr.bf16.mxu1 %v4897_v4  ;;  %3113 = vmatmul.mubr.bf16.gmra.mrb[36].mxu0 %v4898_v6 }
 0x214   : > { %3116 = vmatprep.mubr.bf16.mxu0 %v4899_v8  ;;  %3065 = vmatpush3.bf16.msra.mxu1 %v4268_v50 }
 0x215   : > { %3066 = vmatprep.subr.bf16.mxu1 %v4280_v16 }
 0x218   : > { %3067 = vmatpush3.bf16.msra.mxu1 %v4280_v16 }
 0x219   : > { %3068 = vmatprep.subr.bf16.mxu1 %v4292_v63 }
 0x21a   : > { %3053 = vmatmul.mubr.bf16.gmra.mrb[72].mxu1 %v4900_v12 }
 0x21b   : > { %3056 = vmatprep.mubr.bf16.mxu1 %v4901_v15  ;;  %3117 = vmatmul.mubr.bf16.gmra.mrb[40].mxu0 %v4902_v17 }
 0x21c   : > { %3120 = vmatprep.mubr.bf16.mxu0 %v4903_v19  ;;  %3069 = vmatpush3.bf16.msra.mxu1 %v4292_v63 }
 0x21d   : > { %3070 = vmatprep.subr.bf16.mxu1 %v4304_v14 }
 0x220   : > { %3071 = vmatpush3.bf16.msra.mxu1 %v4304_v14 }
 0x221   : > { %3072 = vmatprep.subr.bf16.mxu1 %v4316_v48 }
 0x222   : > { %3057 = vmatmul.mubr.bf16.gmra.mrb[76].mxu1 %v4904_v23 }
 0x223   : > { %3121 = vmatmul.mubr.bf16.gmra.mrb[44].mxu0 %v4905_v25 }
 0x224   : > { %3073 = vmatpush3.bf16.msra.mxu1 %v4316_v48 }
 0x225   : > { %3074 = vmatprep.subr.bf16.mxu1 %v1400_v57 }
 0x228   : > { %3075 = vmatpush3.bf16.msra.mxu1 %v1400_v57 }
 0x229   : > { %3124 = vmatprep.subr.bf16.mxu1 %v4238_v1 }
 0x2dd   : > { %v4393_v27 = vpop.f32.mrb[64].mxu1 }
 0x2de   : > { %v4395_v29 = vpop.f32.mrb[32].mxu0  ;;  %1575 = vmax.xlane.f32.xlu1 %v4393_v27  ;;  %v4398_v33 = vpop.f32.mrb[65].mxu1 }
 0x2df   : > { %v4400_v35 = vpop.f32.mrb[33].mxu0  ;;  %1571 = vmax.xlane.f32.xlu0 %v4398_v33  ;;  %v4403_v37 = vpop.f32.mrb[66].mxu1 }
 0x2e0   : > { %v4405_v39 = vpop.f32.mrb[67].mxu1  ;;  %v4407_v45 = vpop.f32.mrb[34].mxu0 }
 0x2e1   : > { %v4409_v47 = vpop.f32.mrb[35].mxu0 }
 0x2e2   : > { %1577 = vmax.xlane.f32.xlu1 %v4403_v37 }
 0x2e3   : > { %1573 = vmax.xlane.f32.xlu0 %v4405_v39 }
 0x2e5   : > { %v4413_v49 = vpop.f32.mrb[68].mxu1 }
 0x2e6   : > { %v4415_v13 = vpop.f32.mrb[69].mxu1  ;;  %v4417_v60 = vpop.f32.mrb[36].mxu0 }
 0x2e7   : > { %v4419_v62 = vpop.f32.mrb[37].mxu0  ;;  %1579 = vmax.xlane.f32.xlu0 %v4415_v13  ;;  %v4422_v0 = vpop.f32.mrb[70].mxu1 }
 0x2e8   : > { %v4424_v5 = vpop.f32.mrb[71].mxu1  ;;  %v4426_v32 = vpop.f32.mrb[38].mxu0 }
 0x2e9   : > { %v4428_v44 = vpop.f32.mrb[39].mxu0  ;;  %1581 = vmax.xlane.f32.xlu1 %v4424_v5 }
 0x2eb   : > { %1583 = vmax.xlane.f32.xlu0 %v4413_v49 }
 0x2ed   : > { %1585 = vmax.xlane.f32.xlu1 %v4422_v0  ;;  %v4433_v51 = vpop.f32.mrb[72].mxu1 }
 0x2ee   : > { %v4435_v59 = vpop.f32.mrb[73].mxu1  ;;  %v4437_v61 = vpop.f32.mrb[40].mxu0 }
 0x2ef   : > { %v4439_v22 = vpop.f32.mrb[41].mxu0  ;;  %1587 = vmax.xlane.f32.xlu0 %v4435_v59  ;;  %v4442_v50 = vpop.f32.mrb[74].mxu1 }
 0x2f0   : > { %v4444_v16 = vpop.f32.mrb[75].mxu1  ;;  %v4446_v63 = vpop.f32.mrb[42].mxu0 }
 0x2f1   : > { %v4448_v14 = vpop.f32.mrb[43].mxu0  ;;  %1589 = vmax.xlane.f32.xlu1 %v4444_v16 }
 0x2f3   : > { %1591 = vmax.xlane.f32.xlu0 %v4433_v51 }
 0x2f5   : > { %1593 = vmax.xlane.f32.xlu1 %v4442_v50  ;;  %v4453_v48 = vpop.f32.mrb[76].mxu1 }
 0x2f6   : > { %v4455_v58 = vpop.f32.mrb[77].mxu1  ;;  %v4457_v53 = vpop.f32.mrb[44].mxu0 }
 0x2f7   : > { %v4459_v57 = vpop.f32.mrb[45].mxu0  ;;  %1595 = vmax.xlane.f32.xlu0 %v4455_v58  ;;  %v4462_v52 = vpop.f32.mrb[78].mxu1 }
 0x2f8   : > { %v4464_v34 = vpop.f32.mrb[79].mxu1  ;;  %v4466_v42 = vpop.f32.mrb[46].mxu0 }
 0x2f9   : > { %v4468_v11 = vpop.f32.mrb[47].mxu0  ;;  %1597 = vmax.xlane.f32.xlu1 %v4464_v34 }
 0x2fb   : > { %1599 = vmax.xlane.f32.xlu0 %v4453_v48 }
 0x2fd   : > { %1601 = vmax.xlane.f32.xlu1 %v4462_v52 }
 0x2ff   : > { %1973 = vmax.xlane.f32.xlu0 %v4400_v35 }
 0x301   : > { %1975 = vmax.xlane.f32.xlu1 %v4409_v47 }
 0x303   : > { %1977 = vmax.xlane.f32.xlu0 %v4395_v29 }
 0x305   : > { %1979 = vmax.xlane.f32.xlu1 %v4407_v45 }
 0x307   : > { %1981 = vmax.xlane.f32.xlu0 %v4419_v62 }
 0x309   : > { %1983 = vmax.xlane.f32.xlu1 %v4428_v44 }
 0x30b   : > { %1985 = vmax.xlane.f32.xlu0 %v4417_v60 }
 0x30d   : > { %1987 = vmax.xlane.f32.xlu1 %v4426_v32 }
 0x30f   : > { %1989 = vmax.xlane.f32.xlu0 %v4439_v22 }
 0x311   : > { %1991 = vmax.xlane.f32.xlu1 %v4448_v14 }
 0x313   : > { %1993 = vmax.xlane.f32.xlu0 %v4437_v61 }
 0x315   : > { %1995 = vmax.xlane.f32.xlu1 %v4446_v63 }
 0x317   : > { %1997 = vmax.xlane.f32.xlu0 %v4459_v57 }
 0x319   : > { %2003 = vmax.xlane.f32.xlu1 %v4466_v42 }
 0x31b   : > { %2001 = vmax.xlane.f32.xlu0 %v4457_v53 }
 0x31d   : > { %1999 = vmax.xlane.f32.xlu1 %v4468_v11 }
 0x36b   : > { %v1576_v3 = vpop.xlane.xlu1 %1575 }
 0x36c   : > { %v1605_v10 = vsub.f32 %v4393_v27, %v1576_v3  ;;  %v1572_v7 = vpop.xlane.xlu0 %1571 }
 0x36d   : > { %v1603_v40 = vsub.f32 %v4398_v33, %v1572_v7 }
 0x36e   : > { %v1623_v38 = vmul.f32 1.442695, %v1605_v10 }
 0x36f   : > { %v1619_v41 = vmul.f32 1.442695, %v1603_v40  ;;  %v1578_v9 = vpop.xlane.xlu1 %1577 }
 0x370   : > { %v1606_v46 = vsub.f32 %v4403_v37, %v1578_v9  ;;  %v1574_v20 = vpop.xlane.xlu0 %1573 }
 0x371   : > { %3452 = vpow2.f32 %v1619_v41  ;;  %v1604_v21 = vsub.f32 %v4405_v39, %v1574_v20 }
 0x372   : > { %3454 = vpow2.f32 %v1623_v38  ;;  %v1625_v24 = vmul.f32 1.442695, %v1606_v46 }
 0x373   : > { %v1621_v43 = vmul.f32 1.442695, %v1604_v21 }
 0x374   : > { %v1580_v26 = vpop.xlane.xlu0 %1579 }
 0x375   : > { %3456 = vpow2.f32 %v1621_v43  ;;  %v1607_v55 = vsub.f32 %v4415_v13, %v1580_v26 }
 0x376   : > { %v1582_v2 = vpop.xlane.xlu1 %1581  ;;  %3458 = vpow2.f32 %v1625_v24 }
 0x377   : > { %v1627_v4 = vmul.f32 1.442695, %v1607_v55  ;;  %v1608_v6 = vsub.f32 %v4424_v5, %v1582_v2 }
 0x378   : > { %v1584_v8 = vpop.xlane.xlu0 %1583 }
 0x379   : > { %3460 = vpow2.f32 %v1627_v4  ;;  %v1629_v12 = vmul.f32 1.442695, %v1608_v6  ;;  %v1609_v15 = vsub.f32 %v4413_v49, %v1584_v8 }
 0x37a   : > { %v1586_v17 = vpop.xlane.xlu1 %1585 }
 0x37b   : > { %v4496_v19 = vpop.eup %3452  ;;  %v1631_v23 = vmul.f32 1.442695, %v1609_v15  ;;  %v1610_v25 = vsub.f32 %v4422_v0, %v1586_v17  ;;  %3462 = vpow2.f32 %v1629_v12 }
 0x37c   : > { %v1588_v27 = vpop.xlane.xlu0 %1587  ;;  %1651 = vadd.xlane.f32.xlu0 %v4496_v19  ;;  %v4501_v39 = vpop.eup %3454 }
 0x37d   : > { %3464 = vpow2.f32 %v1631_v23  ;;  %v1633_v33 = vmul.f32 1.442695, %v1610_v25  ;;  %v1611_v37 = vsub.f32 %v4435_v59, %v1588_v27 }
 0x37e   : > { %v1590_v13 = vpop.xlane.xlu1 %1589 }
 0x37f   : > { %v4503_v5 = vpop.eup %3456  ;;  %v1635_v49 = vmul.f32 1.442695, %v1611_v37  ;;  %v1612_v3 = vsub.f32 %v4444_v16, %v1590_v13  ;;  %3466 = vpow2.f32 %v1633_v33 }
 0x380   : > { %v1592_v10 = vpop.xlane.xlu0 %1591  ;;  %1655 = vadd.xlane.f32.xlu0 %v4501_v39  ;;  %1653 = vadd.xlane.f32.xlu1 %v4503_v5  ;;  %v4509_v40 = vpop.eup %3458 }
 0x381   : > { %3468 = vpow2.f32 %v1635_v49  ;;  %v1637_v0 = vmul.f32 1.442695, %v1612_v3  ;;  %v1613_v7 = vsub.f32 %v4433_v51, %v1592_v10 }
 0x382   : > { %v1594_v59 = vpop.xlane.xlu1 %1593 }
 0x383   : > { %v4511_v41 = vpop.eup %3460  ;;  %v1639_v9 = vmul.f32 1.442695, %v1613_v7  ;;  %v1614_v38 = vsub.f32 %v4442_v50, %v1594_v59  ;;  %3470 = vpow2.f32 %v1637_v0 }
 0x384   : > { %1659 = vadd.xlane.f32.xlu0 %v4511_v41  ;;  %v1596_v16 = vpop.xlane.xlu0 %1595  ;;  %1657 = vadd.xlane.f32.xlu1 %v4509_v40 }
 0x385   : > { %3472 = vpow2.f32 %v1639_v9  ;;  %v1641_v46 = vmul.f32 1.442695, %v1614_v38  ;;  %v1615_v20 = vsub.f32 %v4455_v58, %v1596_v16  ;;  %v4517_v21 = vpop.eup %3462 }
 0x386   : > { %v1598_v51 = vpop.xlane.xlu1 %1597 }
 0x387   : > { %v4519_v43 = vpop.eup %3464  ;;  %v1643_v24 = vmul.f32 1.442695, %v1615_v20  ;;  %v1616_v26 = vsub.f32 %v4464_v34, %v1598_v51  ;;  %3474 = vpow2.f32 %v1641_v46 }
 0x388   : > { %1663 = vadd.xlane.f32.xlu0 %v4519_v43  ;;  %v1600_v50 = vpop.xlane.xlu0 %1599  ;;  %1661 = vadd.xlane.f32.xlu1 %v4517_v21 }
 0x389   : > { %3476 = vpow2.f32 %v1643_v24  ;;  %v1645_v55 = vmul.f32 1.442695, %v1616_v26  ;;  %v1617_v2 = vsub.f32 %v4453_v48, %v1600_v50  ;;  %v4525_v4 = vpop.eup %3466 }
 0x38a   : > { %v1602_v58 = vpop.xlane.xlu1 %1601 }
 0x38b   : > { %v4527_v6 = vpop.eup %3468  ;;  %v1647_v8 = vmul.f32 1.442695, %v1617_v2  ;;  %v1618_v12 = vsub.f32 %v4462_v52, %v1602_v58  ;;  %3478 = vpow2.f32 %v1645_v55 }
 0x38c   : > { %1667 = vadd.xlane.f32.xlu0 %v4527_v6  ;;  %v1974_v34 = vpop.xlane.xlu0 %1973  ;;  %1665 = vadd.xlane.f32.xlu1 %v4525_v4 }
 0x38d   : > { %3480 = vpow2.f32 %v1647_v8  ;;  %v1649_v15 = vmul.f32 1.442695, %v1618_v12  ;;  %v2005_v17 = vsub.f32 %v4400_v35, %v1974_v34  ;;  %v4533_v23 = vpop.eup %3470 }
 0x38e   : > { %v1976_v48 = vpop.xlane.xlu1 %1975 }
 0x38f   : > { %v4535_v25 = vpop.eup %3472  ;;  %v2021_v27 = vmul.f32 1.442695, %v2005_v17  ;;  %v2006_v33 = vsub.f32 %v4409_v47, %v1976_v48  ;;  %3482 = vpow2.f32 %v1649_v15 }
 0x390   : > { %1671 = vadd.xlane.f32.xlu0 %v4535_v25  ;;  %v1978_v52 = vpop.xlane.xlu0 %1977  ;;  %1669 = vadd.xlane.f32.xlu1 %v4533_v23 }
 0x391   : > { %3484 = vpow2.f32 %v2021_v27  ;;  %v2023_v37 = vmul.f32 1.442695, %v2006_v33  ;;  %v2007_v13 = vsub.f32 %v4395_v29, %v1978_v52  ;;  %v4541_v49 = vpop.eup %3474 }
 0x392   : > { %v1980_v35 = vpop.xlane.xlu1 %1979 }
 0x393   : > { %v4543_v3 = vpop.eup %3476  ;;  %v2025_v10 = vmul.f32 1.442695, %v2007_v13  ;;  %v2008_v0 = vsub.f32 %v4407_v45, %v1980_v35  ;;  %3486 = vpow2.f32 %v2023_v37 }
 0x394   : > { %1675 = vadd.xlane.f32.xlu0 %v4543_v3  ;;  %v1982_v47 = vpop.xlane.xlu0 %1981  ;;  %1673 = vadd.xlane.f32.xlu1 %v4541_v49 }
 0x395   : > { %3488 = vpow2.f32 %v2025_v10  ;;  %v2027_v7 = vmul.f32 1.442695, %v2008_v0  ;;  %v2009_v59 = vsub.f32 %v4419_v62, %v1982_v47  ;;  %v4549_v9 = vpop.eup %3478 }
 0x396   : > { %v1984_v29 = vpop.xlane.xlu1 %1983 }
 0x397   : > { %v4551_v38 = vpop.eup %3480  ;;  %v2029_v16 = vmul.f32 1.442695, %v2009_v59  ;;  %v2010_v46 = vsub.f32 %v4428_v44, %v1984_v29  ;;  %3490 = vpow2.f32 %v2027_v7 }
 0x398   : > { %1679 = vadd.xlane.f32.xlu0 %v4551_v38  ;;  %v1986_v45 = vpop.xlane.xlu0 %1985  ;;  %1677 = vadd.xlane.f32.xlu1 %v4549_v9 }
 0x399   : > { %3492 = vpow2.f32 %v2029_v16  ;;  %v2031_v20 = vmul.f32 1.442695, %v2010_v46  ;;  %v2011_v51 = vsub.f32 %v4417_v60, %v1986_v45  ;;  %v4557_v24 = vpop.eup %3482 }
 0x39a   : > { %v1988_v62 = vpop.xlane.xlu1 %1987 }
 0x39b   : > { %v4559_v26 = vpop.eup %3484  ;;  %v2033_v50 = vmul.f32 1.442695, %v2011_v51  ;;  %v2012_v55 = vsub.f32 %v4426_v32, %v1988_v62  ;;  %3494 = vpow2.f32 %v2031_v20 }
 0x39c   : > { %2053 = vadd.xlane.f32.xlu0 %v4559_v26  ;;  %v1990_v44 = vpop.xlane.xlu0 %1989  ;;  %1681 = vadd.xlane.f32.xlu1 %v4557_v24 }
 0x39d   : > { %3496 = vpow2.f32 %v2033_v50  ;;  %v2035_v2 = vmul.f32 1.442695, %v2012_v55  ;;  %v2013_v58 = vsub.f32 %v4439_v22, %v1990_v44  ;;  %v4565_v8 = vpop.eup %3486 }
 0x39e   : > { %v1992_v60 = vpop.xlane.xlu1 %1991 }
 0x39f   : > { %v4567_v12 = vpop.eup %3488  ;;  %v2037_v34 = vmul.f32 1.442695, %v2013_v58  ;;  %v2014_v15 = vsub.f32 %v4448_v14, %v1992_v60  ;;  %3498 = vpow2.f32 %v2035_v2  ;;  %v3404_v2 = vld [vmem:[#allocation9] ss:$8 sps:$4 sm:$0xff]   ;;  %v3406_v58 = vld [vmem:[#allocation9 + $0x4] ss:$8 sps:$4 sm:$0xff]  }
 0x3a0   : > { %2057 = vadd.xlane.f32.xlu0 %v4567_v12  ;;  %v1994_v32 = vpop.xlane.xlu0 %1993  ;;  %2055 = vadd.xlane.f32.xlu1 %v4565_v8  ;;  %v3409_v60 = vld [vmem:[#allocation9 + $0x14] ss:$8 sps:$4 sm:$0xff]  }
 0x3a1   : > { %3500 = vpow2.f32 %v2037_v34  ;;  %v2039_v17 = vmul.f32 1.442695, %v2014_v15  ;;  %v2015_v48 = vsub.f32 %v4437_v61, %v1994_v32  ;;  %v4573_v27 = vpop.eup %3490  ;;  %2475 = vmatprep.subr.bf16.mxu0 %v3406_v58  ;;  %v3407_v34 = vld [vmem:[#allocation9 + $0x10] ss:$8 sps:$4 sm:$0xff]   ;;  %v3412_v15 = vld [vmem:[#allocation9 + $0x24] ss:$8 sps:$4 sm:$0xff]  }
 0x3a2   : > { %v1996_v22 = vpop.xlane.xlu1 %1995  ;;  %2476 = vmatpush1.bf16.msra.mxu0 %v3404_v2  ;;  %v3410_v32 = vld [vmem:[#allocation9 + $0x20] ss:$8 sps:$4 sm:$0xff]  }
 0x3a3   : > { %v4575_v33 = vpop.eup %3492  ;;  %v2041_v52 = vmul.f32 1.442695, %v2015_v48  ;;  %v2016_v37 = vsub.f32 %v4446_v63, %v1996_v22  ;;  %3502 = vpow2.f32 %v2039_v17  ;;  %2477 = vmatprep.subr.bf16.mxu0 %v3409_v60  ;;  %v3415_v17 = vld [vmem:[#allocation9 + $0x34] ss:$8 sps:$4 sm:$0xff]   ;;  %v3413_v48 = vld [vmem:[#allocation9 + $0x30] ss:$8 sps:$4 sm:$0xff]  }
 0x3a4   : > { %2061 = vadd.xlane.f32.xlu0 %v4575_v33  ;;  %v1998_v14 = vpop.xlane.xlu0 %1997  ;;  %2059 = vadd.xlane.f32.xlu1 %v4573_v27  ;;  %v3418_v22 = vld [vmem:[#allocation9 + $0x44] ss:$8 sps:$4 sm:$0xff]  }
 0x3a5   : > { %3504 = vpow2.f32 %v2041_v52  ;;  %v2043_v13 = vmul.f32 1.442695, %v2016_v37  ;;  %v2017_v35 = vsub.f32 %v4459_v57, %v1998_v14  ;;  %v4581_v10 = vpop.eup %3494  ;;  %v3416_v52 = vld [vmem:[#allocation9 + $0x40] ss:$8 sps:$4 sm:$0xff]   ;;  %v3421_v37 = vld [vmem:[#allocation9 + $0x54] ss:$8 sps:$4 sm:$0xff]  }
 0x3a6   : > { %v2004_v61 = vpop.xlane.xlu1 %2003  ;;  %2478 = vmatpush1.bf16.msra.mxu0 %v3407_v34  ;;  %v3419_v14 = vld [vmem:[#allocation9 + $0x50] ss:$8 sps:$4 sm:$0xff]  }
 0x3a7   : > { %v4583_v0 = vpop.eup %3496  ;;  %v2045_v47 = vmul.f32 1.442695, %v2017_v35  ;;  %3506 = vpow2.f32 %v2043_v13  ;;  %v2020_v57 = vsub.f32 %v4466_v42, %v2004_v61  ;;  %2479 = vmatprep.subr.bf16.mxu0 %v3412_v15  ;;  %v3424_v13 = vld [vmem:[#allocation9 + $0x64] ss:$8 sps:$4 sm:$0xff]   ;;  %v3422_v35 = vld [vmem:[#allocation9 + $0x60] ss:$8 sps:$4 sm:$0xff]  }
 0x3a8   : > { %2065 = vadd.xlane.f32.xlu0 %v4583_v0  ;;  %v2002_v63 = vpop.xlane.xlu0 %2001  ;;  %2063 = vadd.xlane.f32.xlu1 %v4581_v10 }
 0x3a9   : > { %3508 = vpow2.f32 %v2045_v47  ;;  %v2019_v7 = vsub.f32 %v4457_v53, %v2002_v63  ;;  %v4588_v59 = vpop.eup %3498  ;;  %v2051_v53 = vmul.f32 1.442695, %v2020_v57 }
 0x3aa   : > { %v2000_v29 = vpop.xlane.xlu1 %1999  ;;  %2480 = vmatpush1.bf16.msra.mxu0 %v3410_v32 }
 0x3ab   : > { %v4590_v16 = vpop.eup %3500  ;;  %v2049_v46 = vmul.f32 1.442695, %v2019_v7  ;;  %v2018_v45 = vsub.f32 %v4468_v11, %v2000_v29  ;;  %2481 = vmatprep.subr.bf16.mxu0 %v3415_v17 }
 0x3ac   : > { %2069 = vadd.xlane.f32.xlu0 %v4590_v16  ;;  %2067 = vadd.xlane.f32.xlu1 %v4588_v59 }
 0x3ad   : > { %3510 = vpow2.f32 %v2049_v46  ;;  %v2047_v20 = vmul.f32 1.442695, %v2018_v45  ;;  %v4596_v51 = vpop.eup %3502 }
 0x3ae   : > { %2482 = vmatpush1.bf16.msra.mxu0 %v3413_v48 }
 0x3af   : > { %v4598_v62 = vpop.eup %3504  ;;  %3512 = vpow2.f32 %v2047_v20  ;;  %2483 = vmatprep.subr.bf16.mxu0 %v3418_v22 }
 0x3b0   : > { %2073 = vadd.xlane.f32.xlu0 %v4598_v62  ;;  %2071 = vadd.xlane.f32.xlu1 %v4596_v51  ;;  %3514 = vpow2.f32 %v2051_v53 }
 0x3b1   : > { %v4602_v42 = vpop.eup %3506 }
 0x3b2   : > { %2484 = vmatpush1.bf16.msra.mxu0 %v3416_v52 }
 0x3b3   : > { %v4604_v50 = vpop.eup %3508  ;;  %2485 = vmatprep.subr.bf16.mxu0 %v3421_v37 }
 0x3b4   : > { %2077 = vadd.xlane.f32.xlu0 %v4604_v50  ;;  %2075 = vadd.xlane.f32.xlu1 %v4602_v42 }
 0x3b6   : > { %2486 = vmatpush1.bf16.msra.mxu0 %v3419_v14 }
 0x3b7   : > { %v4608_v11 = vpop.eup %3510  ;;  %2487 = vmatprep.subr.bf16.mxu0 %v3424_v13 }
 0x3b8   : > { %2081 = vadd.xlane.f32.xlu0 %v4608_v11 }
 0x3b9   : > { %v4611_v55 = vpop.eup %3512 }
 0x3ba   : > { %2079 = vadd.xlane.f32.xlu1 %v4611_v55  ;;  %v4614_v44 = vpop.eup %3514  ;;  %2488 = vmatpush1.bf16.msra.mxu0 %v3422_v35 }
 0x3be   : > { %2083 = vadd.xlane.f32.xlu1 %v4614_v44 }
 0x409   : > { %v1652_v61 = vpop.xlane.xlu0 %1651 }
 0x40a   : > { %3516 = vrcp.f32 %v1652_v61 }
 0x40d   : > { %v1656_v47 = vpop.xlane.xlu0 %1655  ;;  %v1654_v63 = vpop.xlane.xlu1 %1653 }
 0x40e   : > { %3518 = vrcp.f32 %v1656_v47 }
 0x40f   : > { %3520 = vrcp.f32 %v1654_v63 }
 0x411   : > { %v1660_v7 = vpop.xlane.xlu0 %1659  ;;  %v1658_v29 = vpop.xlane.xlu1 %1657 }
 0x412   : > { %3522 = vrcp.f32 %v1660_v7 }
 0x413   : > { %3524 = vrcp.f32 %v1658_v29 }
 0x414   : > { %v3517_v57 = vpop.eup %3516 }
 0x415   : > { %v1664_v46 = vpop.xlane.xlu0 %1663  ;;  %v1662_v45 = vpop.xlane.xlu1 %1661  ;;  %v1684_v20 = vmul.f32 %v3517_v57, %v4496_v19 }
 0x416   : > { %3526 = vrcp.f32 %v1664_v46 }
 0x417   : > { %3528 = vrcp.f32 %v1662_v45  ;;  %1715 = vst [vmem:[%s4621_s18] sm:$0xff] %v1684_v20 }
 0x418   : > { %v3519_v53 = vpop.eup %3518 }
 0x419   : > { %v3521_v2 = vpop.eup %3520  ;;  %v1688_v58 = vmul.f32 %v3519_v53, %v4501_v39  ;;  %v1668_v60 = vpop.xlane.xlu0 %1667 }
 0x41a   : > { %v1666_v34 = vpop.xlane.xlu1 %1665  ;;  %3530 = vrcp.f32 %v1668_v60  ;;  %v1686_v15 = vmul.f32 %v3521_v2, %v4503_v5 }
 0x41b   : > { %1717 = vst [vmem:[%s4621_s18 + $0x10] sm:$0xff] %v1688_v58  ;;  %3532 = vrcp.f32 %v1666_v34 }
 0x41c   : > { %v3523_v19 = vpop.eup %3522  ;;  %1716 = vst [vmem:[%s4621_s18 + $0x8] sm:$0xff] %v1686_v15  ;;  %v1731_v32 = vpack.c.bf16 %v1686_v15, %v1684_v20 }
 0x41d   : > { %v3525_v17 = vpop.eup %3524  ;;  %v1672_v48 = vpop.xlane.xlu0 %1671  ;;  %v1692_v52 = vmul.f32 %v3523_v19, %v4511_v41 }
 0x41e   : > { %v1670_v22 = vpop.xlane.xlu1 %1669  ;;  %v1690_v37 = vmul.f32 %v3525_v17, %v4509_v40  ;;  %3534 = vrcp.f32 %v1672_v48  ;;  %3076 = vmatprep.mubr.bf16.mxu1 %v1731_v32 }
 0x41f   : > { %3536 = vrcp.f32 %v1670_v22  ;;  %1719 = vst [vmem:[%s4621_s18 + $0x20] sm:$0xff] %v1692_v52 }
 0x420   : > { %v3527_v39 = vpop.eup %3526  ;;  %1718 = vst [vmem:[%s4621_s18 + $0x18] sm:$0xff] %v1690_v37  ;;  %v1732_v5 = vpack.c.bf16 %v1690_v37, %v1688_v58 }
 0x421   : > { %v3529_v14 = vpop.eup %3528  ;;  %v1676_v13 = vpop.xlane.xlu0 %1675  ;;  %v1696_v61 = vmul.f32 %v3527_v39, %v4519_v43 }
 0x422   : > { %v1674_v35 = vpop.xlane.xlu1 %1673  ;;  %3538 = vrcp.f32 %v1676_v13  ;;  %3077 = vmatmul.mubr.bf16.vlgmr.msra.gmra.mrb[80].mxu1 %v1732_v5  ;;  %v1694_v41 = vmul.f32 %v3529_v14, %v4517_v21 }
 0x423   : > { %3125 = vmatpush3.bf16.msra.mxu1 %v4238_v1  ;;  %3540 = vrcp.f32 %v1674_v35  ;;  %1721 = vst [vmem:[%s4621_s18 + $0x30] sm:$0xff] %v1696_v61 }
 0x424   : > { %v3531_v40 = vpop.eup %3530  ;;  %3126 = vmatprep.subr.bf16.mxu1 %v4260_v28  ;;  %1720 = vst [vmem:[%s4621_s18 + $0x28] sm:$0xff] %v1694_v41  ;;  %v1733_v47 = vpack.c.bf16 %v1694_v41, %v1692_v52 }
 0x425   : > { %v3533_v63 = vpop.eup %3532  ;;  %v1680_v7 = vpop.xlane.xlu0 %1679  ;;  %v1700_v43 = vmul.f32 %v3531_v40, %v4527_v6 }
 0x426   : > { %v1678_v29 = vpop.xlane.xlu1 %1677  ;;  %3542 = vrcp.f32 %v1680_v7  ;;  %3080 = vmatprep.mubr.bf16.mxu1 %v1733_v47  ;;  %v1698_v21 = vmul.f32 %v3533_v63, %v4525_v4 }
 0x427   : > { %3127 = vmatpush3.bf16.msra.mxu1 %v4260_v28  ;;  %3544 = vrcp.f32 %v1678_v29  ;;  %1723 = vst [vmem:[%s4621_s18 + $0x40] sm:$0xff] %v1700_v43 }
 0x428   : > { %v3535_v1 = vpop.eup %3534  ;;  %3128 = vmatprep.subr.bf16.mxu1 %v4272_v36  ;;  %1722 = vst [vmem:[%s4621_s18 + $0x38] sm:$0xff] %v1698_v21  ;;  %v1734_v57 = vpack.c.bf16 %v1698_v21, %v1696_v61 }
 0x429   : > { %v3537_v46 = vpop.eup %3536  ;;  %v2054_v45 = vpop.xlane.xlu0 %2053  ;;  %v1704_v6 = vmul.f32 %v3535_v1, %v4535_v25 }
 0x42a   : > { %v1682_v20 = vpop.xlane.xlu1 %1681  ;;  %3546 = vrcp.f32 %v2054_v45  ;;  %3081 = vmatmul.mubr.bf16.gmra.mrb[84].mxu1 %v1734_v57  ;;  %v1702_v4 = vmul.f32 %v3537_v46, %v4533_v23 }
 0x42b   : > { %3129 = vmatpush3.bf16.msra.mxu1 %v4272_v36  ;;  %3548 = vrcp.f32 %v1682_v20  ;;  %1725 = vst [vmem:[%s4621_s18 + $0x50] sm:$0xff] %v1704_v6 }
 0x42c   : > { %v3539_v28 = vpop.eup %3538  ;;  %3130 = vmatprep.subr.bf16.mxu1 %v4284_v18  ;;  %1724 = vst [vmem:[%s4621_s18 + $0x48] sm:$0xff] %v1702_v4  ;;  %v1735_v53 = vpack.c.bf16 %v1702_v4, %v1700_v43 }
 0x42d   : > { %v3541_v2 = vpop.eup %3540  ;;  %v2058_v58 = vpop.xlane.xlu0 %2057  ;;  %v1708_v25 = vmul.f32 %v3539_v28, %v4543_v3 }
 0x42e   : > { %v2056_v60 = vpop.xlane.xlu1 %2055  ;;  %3550 = vrcp.f32 %v2058_v58  ;;  %3084 = vmatprep.mubr.bf16.mxu1 %v1735_v53  ;;  %v1706_v23 = vmul.f32 %v3541_v2, %v4541_v49 }
 0x42f   : > { %3131 = vmatpush3.bf16.msra.mxu1 %v4284_v18  ;;  %3552 = vrcp.f32 %v2056_v60  ;;  %1727 = vst [vmem:[%s4621_s18 + $0x60] sm:$0xff] %v1708_v25 }
 0x430   : > { %v3543_v36 = vpop.eup %3542  ;;  %3132 = vmatprep.subr.bf16.mxu1 %v4296_v56  ;;  %1726 = vst [vmem:[%s4621_s18 + $0x58] sm:$0xff] %v1706_v23  ;;  %v1736_v34 = vpack.c.bf16 %v1706_v23, %v1704_v6 }
 0x431   : > { %v3545_v15 = vpop.eup %3544  ;;  %v2062_v19 = vpop.xlane.xlu0 %2061  ;;  %v1712_v3 = vmul.f32 %v3543_v36, %v4551_v38 }
 0x432   : > { %v2060_v32 = vpop.xlane.xlu1 %2059  ;;  %3554 = vrcp.f32 %v2062_v19  ;;  %3085 = vmatmul.mubr.bf16.gmra.mrb[88].mxu1 %v1736_v34  ;;  %v1710_v49 = vmul.f32 %v3545_v15, %v4549_v9  ;;  %v3425_v15 = vld [vmem:[#allocation9 + $0x70] ss:$8 sps:$4 sm:$0xff]   ;;  %v3430_v19 = vld [vmem:[#allocation9 + $0x84] ss:$8 sps:$4 sm:$0xff]  }
 0x433   : > { %3133 = vmatpush3.bf16.msra.mxu1 %v4296_v56  ;;  %3556 = vrcp.f32 %v2060_v32  ;;  %1729 = vst [vmem:[%s4621_s18 + $0x70] sm:$0xff] %v1712_v3  ;;  %v3433_v32 = vld [vmem:[#allocation9 + $0x94] ss:$8 sps:$4 sm:$0xff]  }
 0x434   : > { %v3547_v18 = vpop.eup %3546  ;;  %3134 = vmatprep.subr.bf16.mxu1 %v4308_v54  ;;  %1728 = vst [vmem:[%s4621_s18 + $0x68] sm:$0xff] %v1710_v49  ;;  %v1737_v17 = vpack.c.bf16 %v1710_v49, %v1708_v25  ;;  %v3434_v49 = vld [vmem:[#allocation9 + $0xa0] ss:$8 sps:$4 sm:$0xff]  }
 0x435   : > { %v3549_v48 = vpop.eup %3548  ;;  %v2066_v22 = vpop.xlane.xlu0 %2065  ;;  %v2086_v38 = vmul.f32 %v3547_v18, %v4559_v26  ;;  %v3437_v18 = vld [vmem:[#allocation9 + $0xb0] ss:$8 sps:$4 sm:$0xff]  }
 0x436   : > { %v2064_v52 = vpop.xlane.xlu1 %2063  ;;  %3558 = vrcp.f32 %v2066_v22  ;;  %3088 = vmatprep.mubr.bf16.mxu1 %v1737_v17  ;;  %v1714_v9 = vmul.f32 %v3549_v48, %v4557_v24  ;;  %v3442_v17 = vld [vmem:[#allocation9 + $0xc4] ss:$8 sps:$4 sm:$0xff]   ;;  %v3440_v48 = vld [vmem:[#allocation9 + $0xc0] ss:$8 sps:$4 sm:$0xff]   ;;  %v3445_v22 = vld [vmem:[#allocation9 + $0xd4] ss:$8 sps:$4 sm:$0xff]  }
 0x437   : > { %3135 = vmatpush3.bf16.msra.mxu1 %v4308_v54  ;;  %3560 = vrcp.f32 %v2064_v52  ;;  %2905 = vst [vmem:[%s4621_s18 + $0x80] sm:$0xff] %v2086_v38  ;;  %v3443_v52 = vld [vmem:[#allocation9 + $0xd0] ss:$8 sps:$4 sm:$0xff]  }
 0x438   : > { %v3551_v56 = vpop.eup %3550  ;;  %3136 = vmatprep.subr.bf16.mxu1 %v4320_v31  ;;  %1730 = vst [vmem:[%s4621_s18 + $0x78] sm:$0xff] %v1714_v9  ;;  %v1738_v37 = vpack.c.bf16 %v1714_v9, %v1712_v3  ;;  %v3436_v3 = vld [vmem:[#allocation9 + $0xa4] ss:$8 sps:$4 sm:$0xff]   ;;  %v3446_v9 = vld [vmem:[#allocation9 + $0xe0] ss:$8 sps:$4 sm:$0xff]  }
 0x439   : > { %v3553_v39 = vpop.eup %3552  ;;  %v2090_v5 = vmul.f32 %v3551_v56, %v4567_v12  ;;  %v2070_v14 = vpop.xlane.xlu0 %2069  ;;  %v3451_v56 = vld [vmem:[#allocation9 + $0xf4] ss:$8 sps:$4 sm:$0xff]  }
 0x43a   : > { %v2068_v26 = vpop.xlane.xlu1 %2067  ;;  %3562 = vrcp.f32 %v2070_v14  ;;  %3089 = vmatmul.mubr.bf16.gmra.mrb[92].mxu1 %v1738_v37  ;;  %v2088_v13 = vmul.f32 %v3553_v39, %v4565_v8  ;;  %v3449_v37 = vld [vmem:[#allocation9 + $0xf0] ss:$8 sps:$4 sm:$0xff]  }
 0x43b   : > { %2907 = vst [vmem:[%s4621_s18 + $0x90] sm:$0xff] %v2090_v5  ;;  %3137 = vmatpush3.bf16.msra.mxu1 %v4320_v31  ;;  %3564 = vrcp.f32 %v2068_v26 }
 0x43c   : > { %v3555_v54 = vpop.eup %3554  ;;  %3138 = vmatprep.subr.bf16.mxu1 %v4330_v30  ;;  %2906 = vst [vmem:[%s4621_s18 + $0x88] sm:$0xff] %v2088_v13  ;;  %v2134_v24 = vpack.c.bf16 %v2088_v13, %v2086_v38  ;;  %v3448_v38 = vld [vmem:[#allocation9 + $0xe4] ss:$8 sps:$4 sm:$0xff]  }
 0x43d   : > { %v3557_v35 = vpop.eup %3556  ;;  %v2074_v61 = vpop.xlane.xlu0 %2073  ;;  %v2094_v41 = vmul.f32 %v3555_v54, %v4575_v33 }
 0x43e   : > { %v2072_v12 = vpop.xlane.xlu1 %2071  ;;  %v2092_v40 = vmul.f32 %v3557_v35, %v4573_v27  ;;  %3566 = vrcp.f32 %v2074_v61  ;;  %3140 = vmatprep.mubr.bf16.mxu1 %v2134_v24 }
 0x43f   : > { %3139 = vmatpush3.bf16.msra.mxu1 %v4330_v30  ;;  %3568 = vrcp.f32 %v2072_v12  ;;  %2909 = vst [vmem:[%s4621_s18 + $0xa0] sm:$0xff] %v2094_v41 }
 0x440   : > { %v3559_v31 = vpop.eup %3558  ;;  %2908 = vst [vmem:[%s4621_s18 + $0x98] sm:$0xff] %v2092_v40  ;;  %v2135_v8 = vpack.c.bf16 %v2092_v40, %v2090_v5 }
 0x441   : > { %v3561_v47 = vpop.eup %3560  ;;  %v2078_v63 = vpop.xlane.xlu0 %2077  ;;  %v2098_v29 = vmul.f32 %v3559_v31, %v4583_v0 }
 0x442   : > { %v2076_v7 = vpop.xlane.xlu1 %2075  ;;  %3570 = vrcp.f32 %v2078_v63  ;;  %3141 = vmatmul.mubr.bf16.vlgmr.msra.gmra.mrb[96].mxu1 %v2135_v8  ;;  %v2096_v27 = vmul.f32 %v3561_v47, %v4581_v10 }
 0x443   : > { %3572 = vrcp.f32 %v2076_v7  ;;  %2911 = vst [vmem:[%s4621_s18 + $0xb0] sm:$0xff] %v2098_v29 }
 0x444   : > { %v3563_v30 = vpop.eup %3562  ;;  %2910 = vst [vmem:[%s4621_s18 + $0xa8] sm:$0xff] %v2096_v27  ;;  %v2136_v33 = vpack.c.bf16 %v2096_v27, %v2094_v41 }
 0x445   : > { %v3565_v43 = vpop.eup %3564  ;;  %v2082_v21 = vpop.xlane.xlu0 %2081  ;;  %v2102_v1 = vmul.f32 %v3563_v30, %v4590_v16 }
 0x446   : > { %3574 = vrcp.f32 %v2082_v21  ;;  %3144 = vmatprep.mubr.bf16.mxu1 %v2136_v33  ;;  %v2100_v0 = vmul.f32 %v3565_v43, %v4588_v59 }
 0x447   : > { %v2080_v57 = vpop.xlane.xlu1 %2079  ;;  %2913 = vst [vmem:[%s4621_s18 + $0xc0] sm:$0xff] %v2102_v1 }
 0x448   : > { %v3567_v46 = vpop.eup %3566  ;;  %3576 = vrcp.f32 %v2080_v57  ;;  %2912 = vst [vmem:[%s4621_s18 + $0xb8] sm:$0xff] %v2100_v0  ;;  %v2137_v10 = vpack.c.bf16 %v2100_v0, %v2098_v29 }
 0x449   : > { %v3569_v45 = vpop.eup %3568  ;;  %v2106_v20 = vmul.f32 %v3567_v46, %v4598_v62 }
 0x44a   : > { %3145 = vmatmul.mubr.bf16.gmra.mrb[100].mxu1 %v2137_v10  ;;  %v2104_v6 = vmul.f32 %v3569_v45, %v4596_v51 }
 0x44b   : > { %v2084_v16 = vpop.xlane.xlu1 %2083  ;;  %2915 = vst [vmem:[%s4621_s18 + $0xd0] sm:$0xff] %v2106_v20 }
 0x44c   : > { %v3571_v4 = vpop.eup %3570  ;;  %3578 = vrcp.f32 %v2084_v16  ;;  %2914 = vst [vmem:[%s4621_s18 + $0xc8] sm:$0xff] %v2104_v6  ;;  %v2138_v59 = vpack.c.bf16 %v2104_v6, %v2102_v1 }
 0x44d   : > { %v3573_v28 = vpop.eup %3572  ;;  %v2110_v53 = vmul.f32 %v3571_v4, %v4604_v50 }
 0x44e   : > { %3148 = vmatprep.mubr.bf16.mxu1 %v2138_v59  ;;  %v2108_v2 = vmul.f32 %v3573_v28, %v4602_v42  ;;  %v3427_v42 = vld [vmem:[#allocation9 + $0x74] ss:$8 sps:$4 sm:$0xff]  }
 0x44f   : > { %2917 = vst [vmem:[%s4621_s18 + $0xe0] sm:$0xff] %v2110_v53  ;;  %2489 = vmatprep.subr.bf16.mxu0 %v3427_v42 }
 0x450   : > { %v3575_v62 = vpop.eup %3574  ;;  %2916 = vst [vmem:[%s4621_s18 + $0xd8] sm:$0xff] %v2108_v2  ;;  %v2139_v58 = vpack.c.bf16 %v2108_v2, %v2106_v20  ;;  %2490 = vmatpush1.bf16.msra.mxu0 %v3425_v15 }
 0x451   : > { %v2114_v51 = vmul.f32 %v3575_v62, %v4608_v11  ;;  %v3428_v11 = vld [vmem:[#allocation9 + $0x80] ss:$8 sps:$4 sm:$0xff]   ;;  %2491 = vmatprep.subr.bf16.mxu0 %v3430_v19 }
 0x452   : > { %v3577_v60 = vpop.eup %3576  ;;  %3149 = vmatmul.mubr.bf16.gmra.mrb[104].mxu1 %v2139_v58 }
 0x453   : > { %v2112_v25 = vmul.f32 %v3577_v60, %v4611_v55  ;;  %2919 = vst [vmem:[%s4621_s18 + $0xf0] sm:$0xff] %v2114_v51  ;;  %v3431_v55 = vld [vmem:[#allocation9 + $0x90] ss:$8 sps:$4 sm:$0xff]  }
 0x454   : > { %2492 = vmatpush1.bf16.msra.mxu0 %v3428_v11 }
 0x455   : > { %2918 = vst [vmem:[%s4621_s18 + $0xe8] sm:$0xff] %v2112_v25  ;;  %v2140_v23 = vpack.c.bf16 %v2112_v25, %v2110_v53  ;;  %2493 = vmatprep.subr.bf16.mxu0 %v3433_v32 }
 0x456   : > { %v3579_v36 = vpop.eup %3578 }
 0x457   : > { %3152 = vmatprep.mubr.bf16.mxu1 %v2140_v23  ;;  %v2116_v50 = vmul.f32 %v3579_v36, %v4614_v44  ;;  %v3439_v44 = vld [vmem:[#allocation9 + $0xb4] ss:$8 sps:$4 sm:$0xff]  }
 0x458   : > { %2494 = vmatpush1.bf16.msra.mxu0 %v3431_v55 }
 0x459   : > { %2920 = vst [vmem:[%s4621_s18 + $0xf8] sm:$0xff] %v2116_v50  ;;  %v2141_v34 = vpack.c.bf16 %v2116_v50, %v2114_v51  ;;  %2495 = vmatprep.subr.bf16.mxu0 %v3436_v3 }
 0x45b   : > { %3153 = vmatmul.mubr.bf16.gmra.mrb[108].mxu1 %v2141_v34 }
 0x45c   : > { %2496 = vmatpush1.bf16.msra.mxu0 %v3434_v49 }
 0x45d   : > { %2497 = vmatprep.subr.bf16.mxu0 %v3439_v44 }
 0x460   : > { %2498 = vmatpush1.bf16.msra.mxu0 %v3437_v18 }
 0x461   : > { %2499 = vmatprep.subr.bf16.mxu0 %v3442_v17 }
 0x464   : > { %2500 = vmatpush1.bf16.msra.mxu0 %v3440_v48 }
 0x465   : > { %2501 = vmatprep.subr.bf16.mxu0 %v3445_v22 }
 0x468   : > { %2502 = vmatpush1.bf16.msra.mxu0 %v3443_v52 }
 0x469   : > { %2503 = vmatprep.subr.bf16.mxu0 %v3448_v38 }
 0x46c   : > { %2504 = vmatpush1.bf16.msra.mxu0 %v3446_v9 }
 0x46d   : > { %2505 = vmatprep.subr.bf16.mxu0 %v3451_v56 }
 0x470   : > { %2506 = vmatpush1.bf16.msra.mxu0 %v3449_v37 }
 0x4f5   : > { %v3078_v39 = vpop.f32.mrb[80].mxu1 }
 0x4f6   : > { %v1773_v5 = vpop.f32.mrb[81].mxu1 }
 0x4f7   : > { %v3079_v14 = vpop.f32.mrb[82].mxu1 }
 0x4f8   : > { %v1837_v26 = vpack.c.bf16 %v3079_v14, %v3078_v39  ;;  %v1776_v13 = vpop.f32.mrb[83].mxu1 }
 0x4f9   : > { %v1836_v54 = vpack.c.bf16 %v1776_v13, %v1773_v5 }
 0x4fd   : > { %v3082_v24 = vpop.f32.mrb[84].mxu1 }
 0x4fe   : > { %v1789_v35 = vpop.f32.mrb[85].mxu1 }
 0x4ff   : > { %v3083_v61 = vpop.f32.mrb[86].mxu1 }
 0x500   : > { %v1839_v12 = vpack.c.bf16 %v3083_v61, %v3082_v24  ;;  %v1792_v41 = vpop.f32.mrb[87].mxu1 }
 0x501   : > { %v1838_v40 = vpack.c.bf16 %v1792_v41, %v1789_v35 }
 0x505   : > { %v3086_v31 = vpop.f32.mrb[88].mxu1 }
 0x506   : > { %v1805_v8 = vpop.f32.mrb[89].mxu1 }
 0x507   : > { %v3087_v47 = vpop.f32.mrb[90].mxu1 }
 0x508   : > { %v1841_v63 = vpack.c.bf16 %v3087_v47, %v3086_v31  ;;  %v1808_v7 = vpop.f32.mrb[91].mxu1 }
 0x509   : > { %v1840_v29 = vpack.c.bf16 %v1808_v7, %v1805_v8 }
 0x50d   : > { %v3090_v27 = vpop.f32.mrb[92].mxu1 }
 0x50e   : > { %v1821_v30 = vpop.f32.mrb[93].mxu1 }
 0x50f   : > { %v3091_v33 = vpop.f32.mrb[94].mxu1 }
 0x510   : > { %v1843_v43 = vpack.c.bf16 %v3091_v33, %v3090_v27  ;;  %v1824_v21 = vpop.f32.mrb[95].mxu1 }
 0x511   : > { %v1842_v1 = vpack.c.bf16 %v1824_v21, %v1821_v30 }
 0x515   : > { %v3142_v0 = vpop.f32.mrb[96].mxu1 }
 0x516   : > { %v2176_v57 = vpop.f32.mrb[97].mxu1 }
 0x517   : > { %v3143_v46 = vpop.f32.mrb[98].mxu1 }
 0x518   : > { %v2240_v10 = vpack.c.bf16 %v3143_v46, %v3142_v0  ;;  %v2179_v45 = vpop.f32.mrb[99].mxu1 }
 0x519   : > { %v2239_v20 = vpack.c.bf16 %v2179_v45, %v2176_v57 }
 0x51b   : > { %2507 = vmatprep.mubr.bf16.mxu0 %v2239_v20 }
 0x51c   : > { %2508 = vmatmul.mubr.bf16.vlgmr.msra.gmra.mrb[48].mxu0 %v1836_v54 }
 0x51d   : > { %v3146_v6 = vpop.f32.mrb[100].mxu1  ;;  %2517 = vmatprep.mubr.bf16.mxu0 %v2240_v10 }
 0x51e   : > { %v2192_v16 = vpop.f32.mrb[101].mxu1 }
 0x51f   : > { %v3147_v4 = vpop.f32.mrb[102].mxu1 }
 0x520   : > { %v2242_v59 = vpack.c.bf16 %v3147_v4, %v3146_v6  ;;  %v2195_v28 = vpop.f32.mrb[103].mxu1 }
 0x521   : > { %v2241_v53 = vpack.c.bf16 %v2195_v28, %v2192_v16 }
 0x524   : > { %2518 = vmatmul.mubr.bf16.gmra.mrb[52].mxu0 %v1837_v26 }
 0x525   : > { %v3150_v2 = vpop.f32.mrb[104].mxu1  ;;  %2527 = vmatprep.mubr.bf16.mxu0 %v2241_v53 }
 0x526   : > { %v2208_v62 = vpop.f32.mrb[105].mxu1 }
 0x527   : > { %v3151_v58 = vpop.f32.mrb[106].mxu1 }
 0x528   : > { %v2244_v51 = vpack.c.bf16 %v3151_v58, %v3150_v2  ;;  %v2211_v60 = vpop.f32.mrb[107].mxu1 }
 0x529   : > { %v2243_v25 = vpack.c.bf16 %v2211_v60, %v2208_v62 }
 0x52c   : > { %2528 = vmatmul.mubr.bf16.gmra.mrb[56].mxu0 %v1838_v40 }
 0x52d   : > { %2537 = vmatprep.mubr.bf16.mxu0 %v2242_v59 }
 0x52e   : > { %v3154_v23 = vpop.f32.mrb[108].mxu1 }
 0x52f   : > { %v2224_v36 = vpop.f32.mrb[109].mxu1 }
 0x530   : > { %v3155_v50 = vpop.f32.mrb[110].mxu1 }
 0x531   : > { %v2246_v34 = vpack.c.bf16 %v3155_v50, %v3154_v23  ;;  %v2227_v42 = vpop.f32.mrb[111].mxu1 }
 0x532   : > { %v2245_v15 = vpack.c.bf16 %v2227_v42, %v2224_v36 }
 0x534   : > { %2538 = vmatmul.mubr.bf16.gmra.mrb[60].mxu0 %v1839_v12 }
 0x535   : > { %2547 = vmatprep.mubr.bf16.mxu0 %v2243_v25 }
 0x53c   : > { %2548 = vmatmul.mubr.bf16.gmra.mrb[64].mxu0 %v1840_v29 }
 0x53d   : > { %2557 = vmatprep.mubr.bf16.mxu0 %v2244_v51 }
 0x544   : > { %2558 = vmatmul.mubr.bf16.gmra.mrb[68].mxu0 %v1841_v63 }
 0x545   : > { %2567 = vmatprep.mubr.bf16.mxu0 %v2245_v15 }
 0x54c   : > { %2568 = vmatmul.mubr.bf16.gmra.mrb[72].mxu0 %v1842_v1 }
 0x54d   : > { %2577 = vmatprep.mubr.bf16.mxu0 %v2246_v34 }
 0x554   : > { %2578 = vmatmul.mubr.bf16.gmra.mrb[76].mxu0 %v1843_v43 }
 0x555   : > { %3679 = shalt.err (!%p3676_p2)
}
 0x556   : > { %s3680_s27 = scalar_lea.hbm %s4707_s30, 4096  ;;  %s3684_s19 = scalar_lea.hbm %s4873_s6, 8192 }
 0x557   : > { %p3681_p13 = scmp.ne.s32.totalorder %s4707_s30, %s3680_s27  ;;  %p3685_p4 = scmp.lt.u32.totalorder %s4707_s30, %s4873_s6 }
 0x558   : > { %p3686_p7 = scmp.lt.u32.totalorder %s3684_s19, %s3680_s27  ;;  %p3688_p11 = scmp.lt.u32.totalorder %s3680_s27, %s4707_s30 }
 0x559   : > { %p3682_p6 = pnand %p3681_p13, %p4906_p0 }
 0x55a   : > { %p3687_p8 = por %p3686_p7, %p3685_p4 }
 0x55b   : > { %p3683_p10 = pneg %p3682_p6 }
 0x55c   : > { %p3689_p1 = por %p3688_p11, %p3687_p8 }
 0x55e   : > { %p3690_p3 = pnand %p3689_p1, %p3683_p10 }
 0x560   : > { %3693 = shalt.err (!%p3690_p3)
}
 0x561   : > { %s3778_s15 = smov 128   ;;  %s3779_s7 = smov 8   ;;  %v2303_v19 = vld [vmem:[%s4871_s4] sm:$0x3] }
 0x562   : > { %3167 = dma.vmem_to_hbm [thread:$0]  (%p4906_p0), %s4710_s13, 4096, %s4707_s30, %s2626_s10, %s3778_s15, %s3778_s15, %s3779_s7   ;;  %v4907_v11 = vld [vmem:[#allocation17_spill] sm:$0xff] }
 0x563   : > { %v4908_v32 = vsub.s32 0, %v4907_v11  ;;  %v4909_v3 = vsub.s32 1, %v4907_v11  ;;  %s4751_s30 = scalar_lea.vmem [#allocation10], %s2791_s17  ;;  %s4817_s27 = scalar_lea.hbm %s4872_s5, %s2962_s16 }
 0x564   : > { %s2639_s17 = sshll.u32 %s4751_s30, 4  ;;  %s2621_s18 = scalar_lea.sflag [#allocation6], %s3996_s9  ;;  %s4819_s17 = int_to_ptr.vmem [resolvable:$true] %s2639_s17 }
 0x565   : > { %v4741_v55 = vrot.slane %v2303_v19, %v4908_v32  ;;  %v4745_v49 = vrot.slane %v2303_v19, %v4909_v3  ;;  %s3694_s19 = scalar_lea.vmem %s4819_s17, 4096  ;;  %s3780_s25 = smov [#allocation10]  }
 0x566   : > { %p3695_p5 = scmp.ne.s32.totalorder %s4819_s17, %s3694_s19  ;;  %s3698_s20 = sshll.u32 %s3780_s25, 4  ;;  %s3699_s20 = int_to_ptr.vmem [resolvable:$false] %s3698_s20 }
 0x567   : > { %s3700_s16 = scalar_lea.vmem %s3699_s20, 8192  ;;  %p3701_p2 = scmp.lt.s32.totalorder %s4819_s17, %s3699_s20 }
 0x568   : > { %p3696_p9 = pnand %p3695_p5, %p4906_p0  ;;  %p3702_p13 = scmp.lt.s32.totalorder %s3700_s16, %s3694_s19 }
 0x56a   : > { %p3697_p12 = pneg %p3696_p9  ;;  %p3703_p6 = por %p3702_p13, %p3701_p2 }
 0x56c   : > { %p3704_p10 = pnand %p3703_p6, %p3697_p12 }
 0x5ef   : > { %v2509_v44 = vpop.f32.mrb[48].mxu0 }
 0x5f0   : > { %v2510_v18 = vadd.f32 %v2509_v44, %v4741_v55  ;;  %v2511_v17 = vpop.f32.mrb[49].mxu0 }
 0x5f1   : > { %v2512_v48 = vadd.f32 %v2511_v17, %v4745_v49  ;;  %v2513_v22 = vpop.f32.mrb[50].mxu0 }
 0x5f2   : > { %2588 = vst [vmem:[%s4751_s30] sm:$0xff] %v2510_v18  ;;  %v2514_v52 = vadd.f32 %v2513_v22, %v4741_v55  ;;  %v2515_v38 = vpop.f32.mrb[51].mxu0 }
 0x5f3   : > { %2589 = vst [vmem:[%s4751_s30 + $0x8] sm:$0xff] %v2512_v48  ;;  %v2516_v9 = vadd.f32 %v2515_v38, %v4745_v49 }
 0x5f4   : > { %2590 = vst [vmem:[%s4751_s30 + $0x10] sm:$0xff] %v2514_v52 }
 0x5f5   : > { %2591 = vst [vmem:[%s4751_s30 + $0x18] sm:$0xff] %v2516_v9 }
 0x5f7   : > { %v2519_v56 = vpop.f32.mrb[52].mxu0 }
 0x5f8   : > { %v2520_v37 = vadd.f32 %v2519_v56, %v4741_v55  ;;  %v2521_v39 = vpop.f32.mrb[53].mxu0 }
 0x5f9   : > { %v2522_v5 = vadd.f32 %v2521_v39, %v4745_v49  ;;  %v2523_v14 = vpop.f32.mrb[54].mxu0 }
 0x5fa   : > { %2592 = vst [vmem:[%s4751_s30 + $0x20] sm:$0xff] %v2520_v37  ;;  %v2524_v26 = vadd.f32 %v2523_v14, %v4741_v55  ;;  %v2525_v13 = vpop.f32.mrb[55].mxu0 }
 0x5fb   : > { %2593 = vst [vmem:[%s4751_s30 + $0x28] sm:$0xff] %v2522_v5  ;;  %v2526_v54 = vadd.f32 %v2525_v13, %v4745_v49 }
 0x5fc   : > { %2594 = vst [vmem:[%s4751_s30 + $0x30] sm:$0xff] %v2524_v26 }
 0x5fd   : > { %2595 = vst [vmem:[%s4751_s30 + $0x38] sm:$0xff] %v2526_v54 }
 0x5ff   : > { %v2529_v24 = vpop.f32.mrb[56].mxu0 }
 0x600   : > { %v2530_v35 = vadd.f32 %v2529_v24, %v4741_v55  ;;  %v2531_v61 = vpop.f32.mrb[57].mxu0 }
 0x601   : > { %v2532_v12 = vadd.f32 %v2531_v61, %v4745_v49  ;;  %v2533_v41 = vpop.f32.mrb[58].mxu0 }
 0x602   : > { %2596 = vst [vmem:[%s4751_s30 + $0x40] sm:$0xff] %v2530_v35  ;;  %v2534_v40 = vadd.f32 %v2533_v41, %v4741_v55  ;;  %v2535_v31 = vpop.f32.mrb[59].mxu0 }
 0x603   : > { %2597 = vst [vmem:[%s4751_s30 + $0x48] sm:$0xff] %v2532_v12  ;;  %v2536_v8 = vadd.f32 %v2535_v31, %v4745_v49 }
 0x604   : > { %2598 = vst [vmem:[%s4751_s30 + $0x50] sm:$0xff] %v2534_v40 }
 0x605   : > { %2599 = vst [vmem:[%s4751_s30 + $0x58] sm:$0xff] %v2536_v8 }
 0x607   : > { %v2539_v47 = vpop.f32.mrb[60].mxu0 }
 0x608   : > { %v2540_v63 = vadd.f32 %v2539_v47, %v4741_v55  ;;  %v2541_v7 = vpop.f32.mrb[61].mxu0 }
 0x609   : > { %v2542_v29 = vadd.f32 %v2541_v7, %v4745_v49  ;;  %v2543_v27 = vpop.f32.mrb[62].mxu0 }
 0x60a   : > { %2600 = vst [vmem:[%s4751_s30 + $0x60] sm:$0xff] %v2540_v63  ;;  %v2544_v30 = vadd.f32 %v2543_v27, %v4741_v55  ;;  %v2545_v33 = vpop.f32.mrb[63].mxu0 }
 0x60b   : > { %2601 = vst [vmem:[%s4751_s30 + $0x68] sm:$0xff] %v2542_v29  ;;  %v2546_v43 = vadd.f32 %v2545_v33, %v4745_v49 }
 0x60c   : > { %2602 = vst [vmem:[%s4751_s30 + $0x70] sm:$0xff] %v2544_v30 }
 0x60d   : > { %2603 = vst [vmem:[%s4751_s30 + $0x78] sm:$0xff] %v2546_v43 }
 0x60f   : > { %v2549_v21 = vpop.f32.mrb[64].mxu0 }
 0x610   : > { %v2550_v1 = vadd.f32 %v2549_v21, %v4741_v55  ;;  %v2551_v0 = vpop.f32.mrb[65].mxu0 }
 0x611   : > { %v2552_v57 = vadd.f32 %v2551_v0, %v4745_v49  ;;  %v2553_v46 = vpop.f32.mrb[66].mxu0 }
 0x612   : > { %2604 = vst [vmem:[%s4751_s30 + $0x80] sm:$0xff] %v2550_v1  ;;  %v2554_v10 = vadd.f32 %v2553_v46, %v4741_v55  ;;  %v2555_v45 = vpop.f32.mrb[67].mxu0 }
 0x613   : > { %2605 = vst [vmem:[%s4751_s30 + $0x88] sm:$0xff] %v2552_v57  ;;  %v2556_v20 = vadd.f32 %v2555_v45, %v4745_v49 }
 0x614   : > { %2606 = vst [vmem:[%s4751_s30 + $0x90] sm:$0xff] %v2554_v10 }
 0x615   : > { %2607 = vst [vmem:[%s4751_s30 + $0x98] sm:$0xff] %v2556_v20 }
 0x617   : > { %v2559_v6 = vpop.f32.mrb[68].mxu0 }
 0x618   : > { %v2560_v16 = vadd.f32 %v2559_v6, %v4741_v55  ;;  %v2561_v4 = vpop.f32.mrb[69].mxu0 }
 0x619   : > { %v2562_v59 = vadd.f32 %v2561_v4, %v4745_v49  ;;  %v2563_v28 = vpop.f32.mrb[70].mxu0 }
 0x61a   : > { %2608 = vst [vmem:[%s4751_s30 + $0xa0] sm:$0xff] %v2560_v16  ;;  %v2564_v53 = vadd.f32 %v2563_v28, %v4741_v55  ;;  %v2565_v2 = vpop.f32.mrb[71].mxu0 }
 0x61b   : > { %2609 = vst [vmem:[%s4751_s30 + $0xa8] sm:$0xff] %v2562_v59  ;;  %v2566_v62 = vadd.f32 %v2565_v2, %v4745_v49 }
 0x61c   : > { %2610 = vst [vmem:[%s4751_s30 + $0xb0] sm:$0xff] %v2564_v53 }
 0x61d   : > { %2611 = vst [vmem:[%s4751_s30 + $0xb8] sm:$0xff] %v2566_v62 }
 0x61f   : > { %v2569_v58 = vpop.f32.mrb[72].mxu0 }
 0x620   : > { %v2570_v51 = vadd.f32 %v2569_v58, %v4741_v55  ;;  %v2571_v60 = vpop.f32.mrb[73].mxu0 }
 0x621   : > { %v2572_v25 = vadd.f32 %v2571_v60, %v4745_v49  ;;  %v2573_v23 = vpop.f32.mrb[74].mxu0 }
 0x622   : > { %2612 = vst [vmem:[%s4751_s30 + $0xc0] sm:$0xff] %v2570_v51  ;;  %v2574_v36 = vadd.f32 %v2573_v23, %v4741_v55  ;;  %v2575_v50 = vpop.f32.mrb[75].mxu0 }
 0x623   : > { %2613 = vst [vmem:[%s4751_s30 + $0xc8] sm:$0xff] %v2572_v25  ;;  %v2576_v34 = vadd.f32 %v2575_v50, %v4745_v49 }
 0x624   : > { %2614 = vst [vmem:[%s4751_s30 + $0xd0] sm:$0xff] %v2574_v36 }
 0x625   : > { %2615 = vst [vmem:[%s4751_s30 + $0xd8] sm:$0xff] %v2576_v34 }
 0x627   : > { %v2579_v42 = vpop.f32.mrb[76].mxu0 }
 0x628   : > { %v2580_v15 = vadd.f32 %v2579_v42, %v4741_v55  ;;  %v2581_v19 = vpop.f32.mrb[77].mxu0 }
 0x629   : > { %v2582_v11 = vadd.f32 %v2581_v19, %v4745_v49  ;;  %v2583_v32 = vpop.f32.mrb[78].mxu0 }
 0x62a   : > { %2616 = vst [vmem:[%s4751_s30 + $0xe0] sm:$0xff] %v2580_v15  ;;  %v2584_v3 = vadd.f32 %v2583_v32, %v4741_v55  ;;  %v2585_v44 = vpop.f32.mrb[79].mxu0 }
 0x62b   : > { %2617 = vst [vmem:[%s4751_s30 + $0xe8] sm:$0xff] %v2582_v11  ;;  %v2586_v18 = vadd.f32 %v2585_v44, %v4745_v49 }
 0x62c   : > { %2618 = vst [vmem:[%s4751_s30 + $0xf0] sm:$0xff] %v2584_v3 }
 0x62d   : > { %2619 = vst [vmem:[%s4751_s30 + $0xf8] sm:$0xff] %v2586_v18 }
 0x62e   : > { %3707 = shalt.err (!%p3704_p10)
}
 0x62f   : > { %s3708_s14 = scalar_lea.hbm %s4817_s27, 4096  ;;  %s3712_s12 = scalar_lea.hbm %s4872_s5, 8192 }
 0x630   : > { %p3709_p4 = scmp.ne.s32.totalorder %s4817_s27, %s3708_s14  ;;  %p3713_p11 = scmp.lt.u32.totalorder %s4817_s27, %s4872_s5 }
 0x631   : > { %p3714_p1 = scmp.lt.u32.totalorder %s3712_s12, %s3708_s14  ;;  %p3716_p5 = scmp.lt.u32.totalorder %s3708_s14, %s4817_s27 }
 0x632   : > { %p3710_p7 = pnand %p3709_p4, %p4906_p0 }
 0x633   : > { %p3715_p3 = por %p3714_p1, %p3713_p11 }
 0x634   : > { %p3711_p8 = pneg %p3710_p7 }
 0x635   : > { %p3717_p9 = por %p3716_p5, %p3715_p3 }
 0x637   : > { %p3718_p12 = pnand %p3717_p9, %p3711_p8 }
 0x639   : > { %3721 = shalt.err (!%p3718_p12)
}
 0x63a   : > { %s3781_s13 = smov 256   ;;  %s3782_s10 = smov 16  }
 0x63b   : > { %3166 = dma.vmem_to_hbm [thread:$0]  (%p4906_p0), %s4819_s17, 4096, %s4817_s27, %s2621_s18, %s3781_s13, %s3781_s13, %s3782_s10  }
 0x63c PF: > { %s2670_s19 = sand.u32 1, %s3756_s21   ;;  %p4910_p2 = scmp.ne.s32.totalorder %s4882_s28, 0 }
 0x63d   : > { %p4911_p13 = scmp.ge.s32.totalorder %s3768_s24, 2  ;;  %s2671_s25 = scalar_lea.sflag [#allocation6], %s2670_s19 }
 0x63f   : > { %p3182_p6 = pnand %p4911_p13, %p4910_p2 }
 0x641   : > { %3747 = dma.done.wait (!%p3182_p6), %s2671_s25, 4096  }
 0x642   : > { %3749 = vsyncadd (!%p3182_p6), %s2671_s25, 4294963200  ;;  %s2680_s20 = scalar_lea.sflag [#allocation12], %s2670_s19 }
 0x643   : > { %3751 = dma.done.wait (!%p3182_p6), %s2680_s20, 4096  }
 0x644   : > { %3753 = vsyncadd (!%p3182_p6), %s2680_s20, 4294963200  ;;  %p24_p0 = scmp.ge.s32.totalorder %s3931_s26, 4   ;;  %s4912_s21 = smov %s3760_s22 }
 0x645   : > { %s4913_s22 = smov %s3764_s23  ;;  %s4914_s23 = smov %s3940_s11 }
 0x646   : > { %s4915_s24 = smov %s3931_s26  ;;  %26 = sbr.rel (!%p24_p0) target bundleno = 8 (0x8), region = 111 }
 0x64d   :  { %2685 = vsyncpa [#allocation5], 1 }
 0x64e   :  { %2687 = vsyncpa [#allocation5 + $0x1], 1 }
 0x64f   :  { %2688 = vsyncpa [#allocation8], 1 }
 0x650   :  { %2689 = vsyncpa [#allocation6], 1 }
 0x651   :  { %2691 = vsyncpa [#allocation6 + $0x1], 1 }
 0x652   :  { %2692 = vsyncpa [#allocation12], 1 }
 0x653   :  { %2694 = vsyncpa [#allocation12 + $0x1], 1 }

</bundles_post_ra>
